<compile_context>
chip_gen: v7x
topology: tpu7x:2x2x1
jax: 0.10.0
libtpu: 0.0.40
codegen_flags: <defaults>
</compile_context>

<pallas_src>
import jax
import jax.numpy as jnp
from jax.experimental import pallas as pl
from jax.experimental.pallas import tpu as pltpu


def _round_up(x, m):
    return ((x + m - 1) // m) * m


def _pick_tile_m(n_rows, cap=1024):
    """Largest row tile (<= cap) giving an even grid (megacore balance);
    fall back to the largest tile with >= 2 steps, else one full tile."""
    if n_rows <= 16:
        return _round_up(max(n_rows, 8), 8)
    fallback = None
    for tm in (2048, 1024, 512, 256, 128, 64, 32, 16):
        if tm > cap:
            continue
        g = pl.cdiv(n_rows, tm)
        if g >= 2:
            if g % 2 == 0:
                return tm            # even grid: both v7x cores equally loaded
            if fallback is None:
                fallback = tm        # >=2 steps but odd grid
    return fallback if fallback is not None else _round_up(min(n_rows, cap), 8)


# ---------------------------------------------------------------------------
# Pallas kernel: fused crisp->fuzzy projection (add-only epilogue)
#   cr = x @ w_b ; sl = |x| @ (-w_a) ; sr = |x| @ w_c
#   center = cr + b_b ; HL = cr + sl + (b_b - b_a) ; HR = cr + sr + (b_b + b_c)
# ---------------------------------------------------------------------------
def _c2f_kernel(x_ref, wb_ref, wna_ref, wc_ref, bias_ref,
                center_ref, hl_ref, hr_ref):
    x = x_ref[...]                         # (tile_m, 2F) f32
    ax = jnp.abs(x)                        # fuzzy_scope uses |X|

    cr = jnp.dot(x, wb_ref[...], preferred_element_type=jnp.float32)
    sl = jnp.dot(ax, wna_ref[...], preferred_element_type=jnp.float32)  # |x| @ (-w_a)
    sr = jnp.dot(ax, wc_ref[...], preferred_element_type=jnp.float32)   # |x| @ w_c

    # bias rows: 0 -> b_b, 1 -> b_b - b_a, 2 -> b_b + b_c  (all f32)
    center_ref[...] = (cr + bias_ref[0:1, :]).astype(center_ref.dtype)
    hl_ref[...] = (cr + sl + bias_ref[1:2, :]).astype(hl_ref.dtype)
    hr_ref[...] = (cr + sr + bias_ref[2:3, :]).astype(hr_ref.dtype)


def crisp_to_fuzzy_project(Xv, w_b, w_a, w_c, b_b, b_a, b_c, *,
                           tile_m=None, tile_m_cap=1024,
                           out_dtype=jnp.float32):
    """Xv: (N, 2F) aggregated node features. Returns (center, HL, HR), each (N, O)."""
    N, K = Xv.shape
    O = w_b.shape[1]
    if tile_m is None:
        tile_m = _pick_tile_m(N, tile_m_cap)
    grid_m = pl.cdiv(N, tile_m)            # boundary blocks are masked; no row padding

    # Folded weights / biases (tiny one-time prep, O(K*O) elements).
    w_na = (-w_a).astype(jnp.float32)
    bias = jnp.concatenate([b_b, b_b - b_a, b_b + b_c],
                           axis=0).astype(jnp.float32)          # (3, O)

    x_spec = pl.BlockSpec((tile_m, K), lambda i: (i, 0))
    # Weight/bias blocks are grid-invariant (~4 KiB each here).  If K*O ever
    # reaches MiB scale, add pipeline_mode=pl.Buffered(1) on these specs to
    # drop the dead second buffer.
    w_spec = pl.BlockSpec((K, O), lambda i: (0, 0))
    b_spec = pl.BlockSpec((3, O), lambda i: (0, 0))
    out_spec = pl.BlockSpec((tile_m, O), lambda i: (i, 0))
    out_shape = jax.ShapeDtypeStruct((N, O), out_dtype)

    # VMEM: double-buffered x tile + 3 double-buffered output tiles + weights.
    out_isz = jnp.dtype(out_dtype).itemsize
    vmem_bytes = (2 * tile_m * K * 4
                  + 2 * 3 * tile_m * O * out_isz
                  + 2 * (3 * K * O + 3 * O) * 4)
    vmem_limit = max(4 * 1024 * 1024, int(1.5 * vmem_bytes))

    center, hl, hr = pl.pallas_call(
        _c2f_kernel,
        out_shape=(out_shape, out_shape, out_shape),
        grid_spec=pltpu.PrefetchScalarGridSpec(
            num_scalar_prefetch=0,
            grid=(grid_m,),
            in_specs=[x_spec, w_spec, w_spec, w_spec, b_spec],
            out_specs=[out_spec, out_spec, out_spec],
        ),
        compiler_params=pltpu.CompilerParams(
            dimension_semantics=("parallel",),
            vmem_limit_bytes=vmem_limit),
    )(Xv.astype(jnp.float32), w_b.astype(jnp.float32), w_na,
      w_c.astype(jnp.float32), bias)

    return center, hl, hr


# ---------------------------------------------------------------------------
# Full forward: hypergraph aggregation (JAX glue) + Pallas projection kernel
# ---------------------------------------------------------------------------
def crisp_to_fuzzy_conv_forward(X, vertex, edges, X0, params, num_edges, *,
                                tile_m=None, tile_m_cap=1024,
                                out_dtype=jnp.float32):
    # TODO(synk): the data-dependent two-hop gather/scatter stays in plain JAX
    # (segment_sum); fusing it into the kernel with a DMA gather would remove
    # the Xv HBM round trip but is left for a later revision.
    del X0  # unused by the PyTorch module's forward as well
    N = X.shape[-2]

    Xve = X[vertex]                                               # (P, F)  gather
    Xe = jax.ops.segment_sum(Xve, edges, num_segments=num_edges)  # (E, F)  aggr='add'
    Xev = jnp.concatenate([Xve, Xe[edges]], axis=-1)              # (P, 2F) gather + cat
    Xv = jax.ops.segment_sum(Xev, vertex, num_segments=N)         # (N, 2F) aggr='add'
    # normalization == Identity (InputNorm=False)

    return crisp_to_fuzzy_project(
        Xv,
        params["w_b"], params["w_a"], params["w_c"],
        params["b_b"], params["b_a"], params["b_c"],
        tile_m=tile_m, tile_m_cap=tile_m_cap, out_dtype=out_dtype)


# ---------------------------------------------------------------------------
# Pure-JAX reference for correctness checking (HIGHEST precision matmuls)
# ---------------------------------------------------------------------------
def _reference(X, vertex, edges, params, num_edges):
    N = X.shape[-2]
    hp = jax.lax.Precision.HIGHEST
    Xve = X[vertex]
    Xe = jax.ops.segment_sum(Xve, edges, num_segments=num_edges)
    Xev = jnp.concatenate([Xve, Xe[edges]], axis=-1)
    Xv = jax.ops.segment_sum(Xev, vertex, num_segments=N)
    center = jnp.dot(Xv, params["w_b"], precision=hp) + params["b_b"]
    scope_l = jnp.dot(jnp.abs(Xv), params["w_a"], precision=hp) + params["b_a"]
    scope_r = jnp.dot(jnp.abs(Xv), params["w_c"], precision=hp) + params["b_c"]
    return center, center - scope_l, center + scope_r


if __name__ == "__main__":
    # Small shapes consistent with the module's forward.
    in_features = 16
    out_features = 32
    N = 1000           # vertices; deliberately NOT a multiple of the row tile
    num_edges = 256    # hyperedges
    P = 4096           # (vertex, edge) incidence pairs

    key = jax.random.PRNGKey(0)
    k_x, k_v, k_e, kb, ka, kc, kbb, kba, kbc = jax.random.split(key, 9)

    X = jax.random.normal(k_x, (N, in_features), dtype=jnp.float32)
    vertex = jax.random.randint(k_v, (P,), 0, N, dtype=jnp.int32)
    edges = jax.random.randint(k_e, (P,), 0, num_edges, dtype=jnp.int32)
    X0 = X  # unused by forward (kept for signature parity)

    # Deterministic init matching reset_parameters(): uniform(0.02, 0.05)
    def u(k, shape):
        return jax.random.uniform(k, shape, jnp.float32, 0.02, 0.05)

    params = {
        "w_b": u(kb, (2 * in_features, out_features)),
        "w_a": u(ka, (2 * in_features, out_features)),
        "w_c": u(kc, (2 * in_features, out_features)),
        "b_b": u(kbb, (1, out_features)),
        "b_a": u(kba, (1, out_features)),
        "b_c": u(kbc, (1, out_features)),
    }

    center, HL, HR = crisp_to_fuzzy_conv_forward(
        X, vertex, edges, X0, params, num_edges)
    jax.block_until_ready((center, HL, HR))

    c_ref, hl_ref, hr_ref = _reference(X, vertex, edges, params, num_edges)

    assert center.shape == (N, out_features)
    assert HL.shape == (N, out_features)
    assert HR.shape == (N, out_features)
    assert jnp.allclose(center, c_ref, atol=1e-3, rtol=1e-3), \
        float(jnp.max(jnp.abs(center - c_ref)))
    assert jnp.allclose(HL, hl_ref, atol=1e-3, rtol=1e-3), \
        float(jnp.max(jnp.abs(HL - hl_ref)))
    assert jnp.allclose(HR, hr_ref, atol=1e-3, rtol=1e-3), \
        float(jnp.max(jnp.abs(HR - hr_ref)))

    print("KERNEL_OK")
</pallas_src>

<mosaic_0001>
module attributes {stable_mosaic.version = 11 : i64} {
  func.func @_c2f_kernel(%arg0: i32, %arg1: memref<512x32xf32, #tpu.memory_space<vmem>>, %arg2: memref<32x32xf32, #tpu.memory_space<vmem>>, %arg3: memref<32x32xf32, #tpu.memory_space<vmem>>, %arg4: memref<32x32xf32, #tpu.memory_space<vmem>>, %arg5: memref<3x32xf32, #tpu.memory_space<vmem>>, %arg6: memref<512x32xf32, #tpu.memory_space<vmem>>, %arg7: memref<512x32xf32, #tpu.memory_space<vmem>>, %arg8: memref<512x32xf32, #tpu.memory_space<vmem>>) attributes {dimension_semantics = [#tpu.dimension_semantics<parallel>], iteration_bounds = array<i64: 2>, scalar_prefetch = 0 : i64, scratch_operands = 0 : i64, tpu.core_type = #tpu.core_type<tc>, window_params = [{transform_indices = @transform_0, window_bounds = array<i64: 512, 32>}, {pipeline_mode = #tpu.pipeline_mode<synchronous>, transform_indices = @transform_1, window_bounds = array<i64: 32, 32>}, {pipeline_mode = #tpu.pipeline_mode<synchronous>, transform_indices = @transform_2, window_bounds = array<i64: 32, 32>}, {pipeline_mode = #tpu.pipeline_mode<synchronous>, transform_indices = @transform_3, window_bounds = array<i64: 32, 32>}, {pipeline_mode = #tpu.pipeline_mode<synchronous>, transform_indices = @transform_4, window_bounds = array<i64: 3, 32>}, {transform_indices = @transform_5, window_bounds = array<i64: 512, 32>}, {transform_indices = @transform_6, window_bounds = array<i64: 512, 32>}, {transform_indices = @transform_7, window_bounds = array<i64: 512, 32>}]} {
    %c0 = arith.constant 0 : index
    %c0_0 = arith.constant 0 : index
    %0 = vector.load %arg1[%c0, %c0_0] : memref<512x32xf32, #tpu.memory_space<vmem>>, vector<512x32xf32>
    %1 = math.absf %0 : vector<512x32xf32>
    %c0_1 = arith.constant 0 : index
    %c0_2 = arith.constant 0 : index
    %2 = vector.load %arg2[%c0_1, %c0_2] : memref<32x32xf32, #tpu.memory_space<vmem>>, vector<32x32xf32>
    %cst = arith.constant dense<0.000000e+00> : vector<512x32xf32>
    %3 = tpu.matmul %0, %2, %cst {dimension_numbers = #tpu.dot_dimension_numbers<[1], [0], [0], [1], [0, 0, 1, 1], [], []>} : vector<512x32xf32>, vector<32x32xf32>, vector<512x32xf32> -> vector<512x32xf32>
    %c0_3 = arith.constant 0 : index
    %c0_4 = arith.constant 0 : index
    %4 = vector.load %arg3[%c0_3, %c0_4] : memref<32x32xf32, #tpu.memory_space<vmem>>, vector<32x32xf32>
    %cst_5 = arith.constant dense<0.000000e+00> : vector<512x32xf32>
    %5 = tpu.matmul %1, %4, %cst_5 {dimension_numbers = #tpu.dot_dimension_numbers<[1], [0], [0], [1], [0, 0, 1, 1], [], []>} : vector<512x32xf32>, vector<32x32xf32>, vector<512x32xf32> -> vector<512x32xf32>
    %c0_6 = arith.constant 0 : index
    %c0_7 = arith.constant 0 : index
    %6 = vector.load %arg4[%c0_6, %c0_7] : memref<32x32xf32, #tpu.memory_space<vmem>>, vector<32x32xf32>
    %cst_8 = arith.constant dense<0.000000e+00> : vector<512x32xf32>
    %7 = tpu.matmul %1, %6, %cst_8 {dimension_numbers = #tpu.dot_dimension_numbers<[1], [0], [0], [1], [0, 0, 1, 1], [], []>} : vector<512x32xf32>, vector<32x32xf32>, vector<512x32xf32> -> vector<512x32xf32>
    %c0_9 = arith.constant 0 : index
    %c0_10 = arith.constant 0 : index
    %8 = vector.load %arg5[%c0_9, %c0_10] : memref<3x32xf32, #tpu.memory_space<vmem>>, vector<1x32xf32>
    %9 = vector.broadcast %8 : vector<1x32xf32> to vector<512x32xf32>
    %10 = arith.addf %3, %9 : vector<512x32xf32>
    %c0_11 = arith.constant 0 : index
    %c0_12 = arith.constant 0 : index
    %11 = vector.load %arg6[%c0_11, %c0_12] : memref<512x32xf32, #tpu.memory_space<vmem>>, vector<512x32xf32>
    tpu.vector_store %arg6[%c0_11, %c0_12], %10 {strides = array<i32>} : memref<512x32xf32, #tpu.memory_space<vmem>>, vector<512x32xf32>,
    %12 = arith.addf %3, %5 : vector<512x32xf32>
    %c1 = arith.constant 1 : index
    %c0_13 = arith.constant 0 : index
    %13 = vector.load %arg5[%c1, %c0_13] : memref<3x32xf32, #tpu.memory_space<vmem>>, vector<1x32xf32>
    %14 = vector.broadcast %13 : vector<1x32xf32> to vector<512x32xf32>
    %15 = arith.addf %12, %14 : vector<512x32xf32>
    %c0_14 = arith.constant 0 : index
    %c0_15 = arith.constant 0 : index
    %16 = vector.load %arg7[%c0_14, %c0_15] : memref<512x32xf32, #tpu.memory_space<vmem>>, vector<512x32xf32>
    tpu.vector_store %arg7[%c0_14, %c0_15], %15 {strides = array<i32>} : memref<512x32xf32, #tpu.memory_space<vmem>>, vector<512x32xf32>,
    %17 = arith.addf %3, %7 : vector<512x32xf32>
    %c2 = arith.constant 2 : index
    %c0_16 = arith.constant 0 : index
    %18 = vector.load %arg5[%c2, %c0_16] : memref<3x32xf32, #tpu.memory_space<vmem>>, vector<1x32xf32>
    %19 = vector.broadcast %18 : vector<1x32xf32> to vector<512x32xf32>
    %20 = arith.addf %17, %19 : vector<512x32xf32>
    %c0_17 = arith.constant 0 : index
    %c0_18 = arith.constant 0 : index
    %21 = vector.load %arg8[%c0_17, %c0_18] : memref<512x32xf32, #tpu.memory_space<vmem>>, vector<512x32xf32>
    tpu.vector_store %arg8[%c0_17, %c0_18], %20 {strides = array<i32>} : memref<512x32xf32, #tpu.memory_space<vmem>>, vector<512x32xf32>,
    return
  }
  func.func @transform_0(%arg0: i32) -> (i32, i32) {
    %c0_i32 = arith.constant 0 : i32
    %c0_i32_0 = arith.constant 0 : i32
    return %arg0, %c0_i32 : i32, i32
  }
  func.func @transform_1(%arg0: i32) -> (i32, i32) {
    %c0_i32 = arith.constant 0 : i32
    %c0_i32_0 = arith.constant 0 : i32
    %c0_i32_1 = arith.constant 0 : i32
    return %c0_i32, %c0_i32_0 : i32, i32
  }
  func.func @transform_2(%arg0: i32) -> (i32, i32) {
    %c0_i32 = arith.constant 0 : i32
    %c0_i32_0 = arith.constant 0 : i32
    %c0_i32_1 = arith.constant 0 : i32
    return %c0_i32, %c0_i32_0 : i32, i32
  }
  func.func @transform_3(%arg0: i32) -> (i32, i32) {
    %c0_i32 = arith.constant 0 : i32
    %c0_i32_0 = arith.constant 0 : i32
    %c0_i32_1 = arith.constant 0 : i32
    return %c0_i32, %c0_i32_0 : i32, i32
  }
  func.func @transform_4(%arg0: i32) -> (i32, i32) {
    %c0_i32 = arith.constant 0 : i32
    %c0_i32_0 = arith.constant 0 : i32
    %c0_i32_1 = arith.constant 0 : i32
    return %c0_i32, %c0_i32_0 : i32, i32
  }
  func.func @transform_5(%arg0: i32) -> (i32, i32) {
    %c0_i32 = arith.constant 0 : i32
    %c0_i32_0 = arith.constant 0 : i32
    return %arg0, %c0_i32 : i32, i32
  }
  func.func @transform_6(%arg0: i32) -> (i32, i32) {
    %c0_i32 = arith.constant 0 : i32
    %c0_i32_0 = arith.constant 0 : i32
    return %arg0, %c0_i32 : i32, i32
  }
  func.func @transform_7(%arg0: i32) -> (i32, i32) {
    %c0_i32 = arith.constant 0 : i32
    %c0_i32_0 = arith.constant 0 : i32
    return %arg0, %c0_i32 : i32, i32
  }
}

</mosaic_0001>

<bundles_post_ra>
// kernel: tpu_custom_call.1
= control target key start
LH: loop header
LB: loop body
LE: loop exit
PB: predicated region body
PF: predicated region fallthrough
CT: control target
= control target key end

     0   :  { %s7269_s0 = inlined_call_operand.vmem [shape: f32[1000,32], index: 0, kind: input, shape index: {}]   ;;  %s7270_s1 = inlined_call_operand.vmem [shape: f32[32,32], index: 1, kind: input, shape index: {}]   ;;  %s7271_s2 = inlined_call_operand.vmem [shape: f32[32,32], index: 2, kind: input, shape index: {}]   ;;  %s7272_s3 = inlined_call_operand.vmem [shape: f32[32,32], index: 3, kind: input, shape index: {}]   ;;  %s7273_s4 = inlined_call_operand.vmem [shape: f32[3,32], index: 4, kind: input, shape index: {}]   ;;  %s7274_s5 = inlined_call_operand.vmem [shape: f32[1000,32], index: 5, kind: output, shape index: {0}]   ;;  %s7275_s6 = inlined_call_operand.vmem [shape: f32[1000,32], index: 6, kind: output, shape index: {1}]   ;;  %s7276_s7 = inlined_call_operand.vmem [shape: f32[1000,32], index: 7, kind: output, shape index: {2}]  }
   0x1   :  { %7313 = sst [smem:[#allocation21_spill]] %s7269_s0 }
   0x2   :  { %s5161_s24 = smov 0   ;;  %s5163_s25 = smov 0  }
   0x3   :  { %s5165_s26 = smov 0  }
   0x4 LB: > { %s5174_s27 = sadd.s32 4294967295, %s5023_s26   ;;  %s5176_s28 = sadd.s32 1, %s5023_s26   ;;  %s5023_s26 = sphi %s5165_s26, %s7373_s26   ;;  %s5019_s25 = sphi %s5163_s25, %s7372_s25   ;;  %s5015_s24 = sphi %s5161_s24, %s7371_s24  }
   0x5   : > { %s132_s29 = ssub.s32 %s5023_s26, %s5176_s28  ;;  %s135_s30 = sadd.s32 1, %s5019_s25 }
   0x6   : > { %p133_p0 = scmp.eq.s32.totalorder %s132_s29, 0  ;;  %p145_p1 = scmp.ne.s32.totalorder %s5019_s25, %s5015_s24 }
   0x7   : > { %p146_p2 = scmp.eq.s32.totalorder %s5174_s27, 1  ;;  %p3888_p3 = scmp.ge.s32.totalorder %s5023_s26, 1 }
   0x8   : > { %s5184_s8 = scalar_select %p133_p0, %s5019_s25, %s135_s30  }
   0x9   : > { %p5186_p4 = por %p146_p2, %p145_p1  ;;  %p251_p5 = scmp.lt.s32.totalorder %s5023_s26, 3 }
   0xb   : > { %p252_p6 = pnand %p3888_p3, %p251_p5 }
   0xd   : > { %255 = sbr.rel (%p252_p6) target bundleno = 667 (0x29b), region = 40 }
  0x14   : > { %v451_v0 = vld [vmem:[%s7270_s1] sm:$0xff]  ;;  %v452_v1 = vld [vmem:[%s7270_s1 + $0x8] sm:$0xff]  ;;  %v453_v2 = vld [vmem:[%s7270_s1 + $0x10] sm:$0xff]  ;;  %s5200_s16 = sshll.u32 %s5174_s27, 6  ;;  %s7315_s0 = sld [smem:[#allocation21_spill]]  ;;  %vm455_vm0 = vcmask 261120  }
  0x15   : > { %v4661_v3 = vpack.c.bf16 %v452_v1, %v451_v0  ;;  %v454_v4 = vld [vmem:[%s7270_s1 + $0x18] sm:$0xff]  ;;  %p299_p7 = scmp.lt.s32.totalorder %s5200_s16, 124  ;;  %v1033_v6 = vld [vmem:[%s7271_s2] sm:$0xff]  ;;  %v1034_v7 = vld [vmem:[%s7271_s2 + $0x8] sm:$0xff]  ;;  %s279_s26 = sand.u32 1, %s5015_s24  }
  0x16   : > { %v4665_v5 = vpack.c.bf16 %v454_v4, %v453_v2  ;;  %v1614_v8 = vld [vmem:[%s7272_s3] sm:$0xff]  ;;  %v1615_v9 = vld [vmem:[%s7272_s3 + $0x8] sm:$0xff]  ;;  %v4669_v10 = vpack.c.bf16 %v1034_v7, %v1033_v6  ;;  %v1035_v12 = vld [vmem:[%s7271_s2 + $0x10] sm:$0xff]  ;;  %s5749_s29 = sshll.u32 %s279_s26, 9  ;;  %s2546_s18 = ssub.s32 (%p5186_p4), 125, %s5200_s16 }
  0x17   : > { %4662 = vmatprep.subr.bf16.mxu0 %v4661_v3  ;;  %4685 = vmatprep.subr.bf16.mxu1 %v4661_v3  ;;  %s300_s21 = scalar_select %p299_p7, %s5200_s16, 124  ;;  %v4677_v11 = vpack.c.bf16 %v1615_v9, %v1614_v8  ;;  %v1036_v13 = vld [vmem:[%s7271_s2 + $0x18] sm:$0xff]  ;;  %v1616_v14 = vld [vmem:[%s7272_s3 + $0x10] sm:$0xff] }
  0x18   : > { %4664 = vmatpush3.bf16.msra.mxu0 %v4661_v3  ;;  %4687 = vmatpush3.bf16.msra.mxu1 %v4661_v3  ;;  %v1617_v17 = vld [vmem:[%s7272_s3 + $0x18] sm:$0xff]  ;;  %v4673_v22 = vpack.c.bf16 %v1036_v13, %v1035_v12  ;;  %s5773_s24 = scalar_lea.vmem [#allocation2], %s5749_s29   ;;  %s6162_s15 = scalar_lea.vmem [#allocation3], %s5749_s29  }
  0x19   : > { %4666 = vmatprep.subr.bf16.mxu0 %v4665_v5  ;;  %4686 = vmatprep.subr.bf16.mxu1 %v4665_v5  ;;  %s3893_s11 = sshll.u32 %s300_s21, 3  ;;  %v4681_v23 = vpack.c.bf16 %v1617_v17, %v1616_v14  ;;  %s6167_s17 = scalar_lea.vmem [#allocation4], %s5749_s29  }
  0x1a   : > { %s5222_s14 = scalar_lea.vmem %s7315_s0, %s3893_s11  ;;  %s4136_s19 = sshll.u32 (%p5186_p4), %s5174_s27, 9 }
  0x1b   : > { %v5234_v15 = vld [vmem:[%s5222_s14] sm:$0xff]  ;;  %v5243_v18 = vld [vmem:[%s5222_s14 + $0x8] sm:$0xff]  ;;  %v5253_v20 = vld [vmem:[%s5222_s14 + $0x10] sm:$0xff]  ;;  %p2547_p8 = scmp.lt.s32.totalorder (%p5186_p4), %s2546_s18, 64  ;;  %s6678_s22 = scalar_lea.vmem (%p5186_p4), %s7274_s5, %s4136_s19  }
  0x1c   : > { %v5237_v16 = vld [vmem:[%s5222_s14 + $0x100] sm:$0xff]  ;;  %4668 = vmatpush3.bf16.msra.mxu0 %v4665_v5  ;;  %4688 = vmatpush3.bf16.msra.mxu1 %v4665_v5  ;;  %v5250_v19 = vld [vmem:[%s5222_s14 + $0x108] sm:$0xff]  ;;  %v5256_v21 = vld [vmem:[%s5222_s14 + $0x110] sm:$0xff] }
  0x1d   : > { %4357 = vmatprep.mubr.msk.f32.mxu0 %vm455_vm0, %v5234_v15  ;;  %4405 = vmatprep.mubr.msk.f32.mxu1 %vm455_vm0, %v5237_v16  ;;  %v5263_v24 = vld [vmem:[%s5222_s14 + $0x18] sm:$0xff]  ;;  %v5273_v26 = vld [vmem:[%s5222_s14 + $0x20] sm:$0xff]  ;;  %v5287_v28 = vld [vmem:[%s5222_s14 + $0x28] sm:$0xff] }
  0x1e   : > { %4670 = vmatprep.subr.bf16.mxu1 %v4669_v10  ;;  %4678 = vmatprep.subr.bf16.mxu0 %v4677_v11  ;;  %v5266_v25 = vld [vmem:[%s5222_s14 + $0x118] sm:$0xff]  ;;  %v5276_v27 = vld [vmem:[%s5222_s14 + $0x120] sm:$0xff]  ;;  %v5290_v29 = vld [vmem:[%s5222_s14 + $0x128] sm:$0xff] }
  0x1f   : > { %4358 = vmatmul.mubr.msk.f32.vlgmr.msra.gmra.mrb[0].mxu0 %vm455_vm0, %v5243_v18  ;;  %4406 = vmatmul.mubr.msk.f32.vlgmr.msra.gmra.mrb[0].mxu1 %vm455_vm0, %v5250_v19  ;;  %v5293_v30 = vld [vmem:[%s5222_s14 + $0x30] sm:$0xff]  ;;  %v5307_v32 = vld [vmem:[%s5222_s14 + $0x38] sm:$0xff]  ;;  %v5313_v34 = vld [vmem:[%s5222_s14 + $0x40] sm:$0xff] }
  0x20   : > { %4672 = vmatpush3.bf16.msra.mxu1 %v4669_v10  ;;  %4680 = vmatpush3.bf16.msra.mxu0 %v4677_v11  ;;  %v5296_v31 = vld [vmem:[%s5222_s14 + $0x130] sm:$0xff]  ;;  %v5310_v33 = vld [vmem:[%s5222_s14 + $0x138] sm:$0xff]  ;;  %v5316_v35 = vld [vmem:[%s5222_s14 + $0x140] sm:$0xff] }
  0x21   : > { %4360 = vmatprep.mubr.msk.f32.mxu0 %vm455_vm0, %v5253_v20  ;;  %4408 = vmatprep.mubr.msk.f32.mxu1 %vm455_vm0, %v5256_v21  ;;  %v5327_v36 = vld [vmem:[%s5222_s14 + $0x48] sm:$0xff]  ;;  %v5333_v38 = vld [vmem:[%s5222_s14 + $0x50] sm:$0xff]  ;;  %v5347_v40 = vld [vmem:[%s5222_s14 + $0x58] sm:$0xff] }
  0x22   : > { %4674 = vmatprep.subr.bf16.mxu1 %v4673_v22  ;;  %4682 = vmatprep.subr.bf16.mxu0 %v4681_v23  ;;  %v5330_v37 = vld [vmem:[%s5222_s14 + $0x148] sm:$0xff]  ;;  %v5336_v39 = vld [vmem:[%s5222_s14 + $0x150] sm:$0xff]  ;;  %v5350_v41 = vld [vmem:[%s5222_s14 + $0x158] sm:$0xff] }
  0x23   : > { %4361 = vmatmul.mubr.msk.f32.gmra.mrb[2].mxu0 %vm455_vm0, %v5263_v24  ;;  %4409 = vmatmul.mubr.msk.f32.gmra.mrb[2].mxu1 %vm455_vm0, %v5266_v25  ;;  %v5353_v42 = vld [vmem:[%s5222_s14 + $0x60] sm:$0xff]  ;;  %v5367_v44 = vld [vmem:[%s5222_s14 + $0x68] sm:$0xff]  ;;  %v5373_v46 = vld [vmem:[%s5222_s14 + $0x70] sm:$0xff] }
  0x24   : > { %4363 = vmatprep.mubr.msk.f32.mxu0 %vm455_vm0, %v5273_v26  ;;  %4411 = vmatprep.mubr.msk.f32.mxu1 %vm455_vm0, %v5276_v27  ;;  %v5356_v43 = vld [vmem:[%s5222_s14 + $0x160] sm:$0xff]  ;;  %v5370_v45 = vld [vmem:[%s5222_s14 + $0x168] sm:$0xff]  ;;  %v5376_v47 = vld [vmem:[%s5222_s14 + $0x170] sm:$0xff] }
  0x25   : > { %4676 = vmatpush3.bf16.msra.mxu1 %v4673_v22  ;;  %4684 = vmatpush3.bf16.msra.mxu0 %v4681_v23  ;;  %v5387_v48 = vld [vmem:[%s5222_s14 + $0x78] sm:$0xff]  ;;  %v5393_v50 = vld [vmem:[%s5222_s14 + $0x80] sm:$0xff]  ;;  %v5407_v52 = vld [vmem:[%s5222_s14 + $0x88] sm:$0xff]  ;;  %v387_v22 = vand.u32 2147483647, %v5234_v15 }
  0x26   : > { %v5390_v49 = vld [vmem:[%s5222_s14 + $0x178] sm:$0xff]  ;;  %v5396_v51 = vld [vmem:[%s5222_s14 + $0x180] sm:$0xff]  ;;  %v5410_v53 = vld [vmem:[%s5222_s14 + $0x188] sm:$0xff]  ;;  %v389_v15 = vand.u32 2147483647, %v5253_v20 }
  0x27   : > { %4364 = vmatmul.mubr.msk.f32.gmra.mrb[4].mxu0 %vm455_vm0, %v5287_v28  ;;  %4412 = vmatmul.mubr.msk.f32.gmra.mrb[4].mxu1 %vm455_vm0, %v5290_v29  ;;  %v5413_v54 = vld [vmem:[%s5222_s14 + $0x90] sm:$0xff]  ;;  %v5427_v56 = vld [vmem:[%s5222_s14 + $0x98] sm:$0xff]  ;;  %v5433_v58 = vld [vmem:[%s5222_s14 + $0xa0] sm:$0xff]  ;;  %v393_v20 = vand.u32 2147483647, %v5293_v30 }
  0x28   : > { %4366 = vmatprep.mubr.msk.f32.mxu0 %vm455_vm0, %v5293_v30  ;;  %4414 = vmatprep.mubr.msk.f32.mxu1 %vm455_vm0, %v5296_v31  ;;  %v5416_v55 = vld [vmem:[%s5222_s14 + $0x190] sm:$0xff]  ;;  %v5430_v57 = vld [vmem:[%s5222_s14 + $0x198] sm:$0xff]  ;;  %v5436_v59 = vld [vmem:[%s5222_s14 + $0x1a0] sm:$0xff]  ;;  %v397_v30 = vand.u32 2147483647, %v5333_v38 }
  0x29   : > { %v5447_v60 = vld [vmem:[%s5222_s14 + $0xa8] sm:$0xff]  ;;  %v5453_v62 = vld [vmem:[%s5222_s14 + $0xb0] sm:$0xff]  ;;  %v5467_v0 = vld [vmem:[%s5222_s14 + $0xb8] sm:$0xff] }
  0x2a   : > { %v5450_v61 = vld [vmem:[%s5222_s14 + $0x1a8] sm:$0xff]  ;;  %v5456_v63 = vld [vmem:[%s5222_s14 + $0x1b0] sm:$0xff]  ;;  %v5470_v1 = vld [vmem:[%s5222_s14 + $0x1b8] sm:$0xff] }
  0x2b   : > { %4367 = vmatmul.mubr.msk.f32.gmra.mrb[6].mxu0 %vm455_vm0, %v5307_v32  ;;  %4415 = vmatmul.mubr.msk.f32.gmra.mrb[6].mxu1 %vm455_vm0, %v5310_v33  ;;  %v5473_v2 = vld [vmem:[%s5222_s14 + $0xc0] sm:$0xff]  ;;  %v5487_v4 = vld [vmem:[%s5222_s14 + $0xc8] sm:$0xff]  ;;  %v5493_v6 = vld [vmem:[%s5222_s14 + $0xd0] sm:$0xff] }
  0x2c   : > { %4369 = vmatprep.mubr.msk.f32.mxu0 %vm455_vm0, %v5313_v34  ;;  %4417 = vmatprep.mubr.msk.f32.mxu1 %vm455_vm0, %v5316_v35  ;;  %v5476_v3 = vld [vmem:[%s5222_s14 + $0x1c0] sm:$0xff]  ;;  %v5490_v5 = vld [vmem:[%s5222_s14 + $0x1c8] sm:$0xff]  ;;  %v5496_v7 = vld [vmem:[%s5222_s14 + $0x1d0] sm:$0xff] }
  0x2d   : > { %v5507_v8 = vld [vmem:[%s5222_s14 + $0xd8] sm:$0xff]  ;;  %v5513_v10 = vld [vmem:[%s5222_s14 + $0xe0] sm:$0xff]  ;;  %v5527_v12 = vld [vmem:[%s5222_s14 + $0xe8] sm:$0xff] }
  0x2e   : > { %v5510_v9 = vld [vmem:[%s5222_s14 + $0x1d8] sm:$0xff]  ;;  %v5516_v11 = vld [vmem:[%s5222_s14 + $0x1e0] sm:$0xff]  ;;  %v5530_v13 = vld [vmem:[%s5222_s14 + $0x1e8] sm:$0xff] }
  0x2f   : > { %4370 = vmatmul.mubr.msk.f32.gmra.mrb[8].mxu0 %vm455_vm0, %v5327_v36  ;;  %4418 = vmatmul.mubr.msk.f32.gmra.mrb[8].mxu1 %vm455_vm0, %v5330_v37  ;;  %7316 = vst [vmem:[#allocation5_spill] sm:$0xff] %v5510_v9  ;;  %7317 = vst [vmem:[#allocation6_spill] sm:$0xff] %v5516_v11  ;;  %v5533_v14 = vld [vmem:[%s5222_s14 + $0xf0] sm:$0xff]  ;;  %v5548_v23 = vld [vmem:[%s5222_s14 + $0xf8] sm:$0xff] }
  0x30   : > { %4372 = vmatprep.mubr.msk.f32.mxu0 %vm455_vm0, %v5333_v38  ;;  %4420 = vmatprep.mubr.msk.f32.mxu1 %vm455_vm0, %v5336_v39  ;;  %v5536_v17 = vld [vmem:[%s5222_s14 + $0x1f0] sm:$0xff]  ;;  %v401_v38 = vand.u32 2147483647, %v5373_v46 }
  0x31   : > { %7318 = vst [vmem:[#allocation7_spill] sm:$0xff] %v5536_v17 }
  0x33   : > { %4373 = vmatmul.mubr.msk.f32.gmra.mrb[10].mxu0 %vm455_vm0, %v5347_v40  ;;  %4421 = vmatmul.mubr.msk.f32.gmra.mrb[10].mxu1 %vm455_vm0, %v5350_v41 }
  0x34   : > { %4375 = vmatprep.mubr.msk.f32.mxu0 %vm455_vm0, %v5353_v42  ;;  %4423 = vmatprep.mubr.msk.f32.mxu1 %vm455_vm0, %v5356_v43 }
  0x37   : > { %4376 = vmatmul.mubr.msk.f32.gmra.mrb[12].mxu0 %vm455_vm0, %v5367_v44  ;;  %4424 = vmatmul.mubr.msk.f32.gmra.mrb[12].mxu1 %vm455_vm0, %v5370_v45 }
  0x38   : > { %4378 = vmatprep.mubr.msk.f32.mxu0 %vm455_vm0, %v5373_v46  ;;  %4426 = vmatprep.mubr.msk.f32.mxu1 %vm455_vm0, %v5376_v47  ;;  %v405_v46 = vand.u32 2147483647, %v5413_v54 }
  0x3b   : > { %4379 = vmatmul.mubr.msk.f32.gmra.mrb[14].mxu0 %vm455_vm0, %v5387_v48  ;;  %4427 = vmatmul.mubr.msk.f32.gmra.mrb[14].mxu1 %vm455_vm0, %v5390_v49 }
  0x3c   : > { %4381 = vmatprep.mubr.msk.f32.mxu0 %vm455_vm0, %v5393_v50  ;;  %4429 = vmatprep.mubr.msk.f32.mxu1 %vm455_vm0, %v5396_v51 }
  0x3f   : > { %4382 = vmatmul.mubr.msk.f32.gmra.mrb[16].mxu0 %vm455_vm0, %v5407_v52  ;;  %4430 = vmatmul.mubr.msk.f32.gmra.mrb[16].mxu1 %vm455_vm0, %v5410_v53 }
  0x40   : > { %4384 = vmatprep.mubr.msk.f32.mxu0 %vm455_vm0, %v5413_v54  ;;  %4432 = vmatprep.mubr.msk.f32.mxu1 %vm455_vm0, %v5416_v55  ;;  %v409_v54 = vand.u32 2147483647, %v5453_v62 }
  0x43   : > { %4385 = vmatmul.mubr.msk.f32.gmra.mrb[18].mxu0 %vm455_vm0, %v5427_v56  ;;  %4433 = vmatmul.mubr.msk.f32.gmra.mrb[18].mxu1 %vm455_vm0, %v5430_v57 }
  0x44   : > { %4387 = vmatprep.mubr.msk.f32.mxu0 %vm455_vm0, %v5433_v58  ;;  %4435 = vmatprep.mubr.msk.f32.mxu1 %vm455_vm0, %v5436_v59 }
  0x47   : > { %4388 = vmatmul.mubr.msk.f32.gmra.mrb[20].mxu0 %vm455_vm0, %v5447_v60  ;;  %4436 = vmatmul.mubr.msk.f32.gmra.mrb[20].mxu1 %vm455_vm0, %v5450_v61 }
  0x48   : > { %4390 = vmatprep.mubr.msk.f32.mxu0 %vm455_vm0, %v5453_v62  ;;  %4438 = vmatprep.mubr.msk.f32.mxu1 %vm455_vm0, %v5456_v63  ;;  %v413_v62 = vand.u32 2147483647, %v5493_v6 }
  0x4b   : > { %4391 = vmatmul.mubr.msk.f32.gmra.mrb[22].mxu0 %vm455_vm0, %v5467_v0  ;;  %4439 = vmatmul.mubr.msk.f32.gmra.mrb[22].mxu1 %vm455_vm0, %v5470_v1 }
  0x4c   : > { %4393 = vmatprep.mubr.msk.f32.mxu0 %vm455_vm0, %v5473_v2  ;;  %4441 = vmatprep.mubr.msk.f32.mxu1 %vm455_vm0, %v5476_v3 }
  0x4f   : > { %4394 = vmatmul.mubr.msk.f32.gmra.mrb[24].mxu0 %vm455_vm0, %v5487_v4  ;;  %4442 = vmatmul.mubr.msk.f32.gmra.mrb[24].mxu1 %vm455_vm0, %v5490_v5 }
  0x50   : > { %4396 = vmatprep.mubr.msk.f32.mxu0 %vm455_vm0, %v5493_v6  ;;  %4444 = vmatprep.mubr.msk.f32.mxu1 %vm455_vm0, %v5496_v7  ;;  %v417_v6 = vand.u32 2147483647, %v5533_v14 }
  0x53   : > { %4397 = vmatmul.mubr.msk.f32.gmra.mrb[26].mxu0 %vm455_vm0, %v5507_v8  ;;  %4445 = vmatmul.mubr.msk.f32.gmra.mrb[26].mxu1 %vm455_vm0, %v5510_v9  ;;  %v388_v9 = vand.u32 2147483647, %v5243_v18  ;;  %v391_v18 = vand.u32 2147483647, %v5273_v26  ;;  %v395_v26 = vand.u32 2147483647, %v5313_v34 }
  0x54   : > { %4399 = vmatprep.mubr.msk.f32.mxu0 %vm455_vm0, %v5513_v10  ;;  %4447 = vmatprep.mubr.msk.f32.mxu1 %vm455_vm0, %v5516_v11  ;;  %v5551_v11 = vld [vmem:[%s5222_s14 + $0x1f8] sm:$0xff]  ;;  %v399_v34 = vand.u32 2147483647, %v5353_v42  ;;  %v403_v42 = vand.u32 2147483647, %v5393_v50 }
  0x55   : > { %7319 = vst [vmem:[#allocation8_spill] sm:$0xff] %v5551_v11  ;;  %v407_v50 = vand.u32 2147483647, %v5433_v58  ;;  %v411_v58 = vand.u32 2147483647, %v5473_v2 }
  0x56   : > { %v415_v2 = vand.u32 2147483647, %v5513_v10  ;;  %v420_v10 = vand.u32 2147483647, %v5250_v19  ;;  %v424_v19 = vand.u32 2147483647, %v5290_v29 }
  0x57   : > { %4400 = vmatmul.mubr.msk.f32.gmra.mrb[28].mxu0 %vm455_vm0, %v5527_v12  ;;  %4448 = vmatmul.mubr.msk.f32.gmra.mrb[28].mxu1 %vm455_vm0, %v5530_v13  ;;  %v428_v29 = vand.u32 2147483647, %v5330_v37  ;;  %v432_v37 = vand.u32 2147483647, %v5370_v45  ;;  %v436_v45 = vand.u32 2147483647, %v5410_v53 }
  0x58   : > { %4402 = vmatprep.mubr.msk.f32.mxu0 %vm455_vm0, %v5533_v14  ;;  %4450 = vmatprep.mubr.msk.f32.mxu1 %vm455_vm0, %v5536_v17  ;;  %v390_v17 = vand.u32 2147483647, %v5263_v24  ;;  %v394_v24 = vand.u32 2147483647, %v5307_v32  ;;  %v398_v32 = vand.u32 2147483647, %v5347_v40 }
  0x59   : > { %v402_v40 = vand.u32 2147483647, %v5387_v48  ;;  %v406_v48 = vand.u32 2147483647, %v5427_v56  ;;  %v410_v56 = vand.u32 2147483647, %v5467_v0 }
  0x5a   : > { %v414_v0 = vand.u32 2147483647, %v5507_v8  ;;  %v418_v8 = vand.u32 2147483647, %v5548_v23  ;;  %v440_v53 = vand.u32 2147483647, %v5450_v61 }
  0x5b   : > { %4403 = vmatmul.mubr.msk.f32.gmra.mrb[30].mxu0 %vm455_vm0, %v5548_v23  ;;  %4451 = vmatmul.mubr.msk.f32.gmra.mrb[30].mxu1 %vm455_vm0, %v5551_v11  ;;  %v392_v11 = vand.u32 2147483647, %v5287_v28  ;;  %v396_v28 = vand.u32 2147483647, %v5327_v36  ;;  %v400_v36 = vand.u32 2147483647, %v5367_v44 }
  0x5c   : > { %4461 = vmatprep.mubr.msk.f32.mxu1 %vm455_vm0, %v387_v22  ;;  %4565 = vmatprep.mubr.msk.f32.mxu0 %vm455_vm0, %v387_v22  ;;  %v404_v44 = vand.u32 2147483647, %v5407_v52  ;;  %v408_v52 = vand.u32 2147483647, %v5447_v60  ;;  %v412_v60 = vand.u32 2147483647, %v5487_v4 }
  0x5d   : > { %v416_v4 = vand.u32 2147483647, %v5527_v12  ;;  %v422_v12 = vand.u32 2147483647, %v5266_v25  ;;  %v426_v25 = vand.u32 2147483647, %v5310_v33 }
  0x5e   : > { %v430_v33 = vand.u32 2147483647, %v5350_v41  ;;  %v434_v41 = vand.u32 2147483647, %v5390_v49  ;;  %v438_v49 = vand.u32 2147483647, %v5430_v57 }
  0x5f   : > { %4462 = vmatmul.mubr.msk.f32.vlgmr.msra.gmra.mrb[32].mxu1 %vm455_vm0, %v388_v9  ;;  %4566 = vmatmul.mubr.msk.f32.vlgmr.msra.gmra.mrb[32].mxu0 %vm455_vm0, %v388_v9  ;;  %v419_v9 = vand.u32 2147483647, %v5237_v16  ;;  %v423_v16 = vand.u32 2147483647, %v5276_v27  ;;  %v427_v27 = vand.u32 2147483647, %v5316_v35 }
  0x60   : > { %4464 = vmatprep.mubr.msk.f32.mxu1 %vm455_vm0, %v389_v15  ;;  %4568 = vmatprep.mubr.msk.f32.mxu0 %vm455_vm0, %v389_v15  ;;  %v431_v35 = vand.u32 2147483647, %v5356_v43  ;;  %v435_v43 = vand.u32 2147483647, %v5396_v51  ;;  %v439_v51 = vand.u32 2147483647, %v5436_v59 }
  0x61   : > { %v442_v57 = vand.u32 2147483647, %v5470_v1  ;;  %v443_v59 = vand.u32 2147483647, %v5476_v3  ;;  %v444_v61 = vand.u32 2147483647, %v5490_v5 }
  0x62   : > { %v7320_v1 = vld [vmem:[#allocation5_spill] sm:$0xff]  ;;  %v7321_v3 = vld [vmem:[#allocation6_spill] sm:$0xff]  ;;  %v448_v5 = vand.u32 2147483647, %v5530_v13  ;;  %v7323_v23 = vld [vmem:[#allocation8_spill] sm:$0xff] }
  0x63   : > { %4465 = vmatmul.mubr.msk.f32.gmra.mrb[34].mxu1 %vm455_vm0, %v390_v17  ;;  %4569 = vmatmul.mubr.msk.f32.gmra.mrb[34].mxu0 %vm455_vm0, %v390_v17  ;;  %v446_v14 = vand.u32 2147483647, %v7320_v1  ;;  %v447_v17 = vand.u32 2147483647, %v7321_v3  ;;  %v450_v15 = vand.u32 2147483647, %v7323_v23 }
  0x64   : > { %4467 = vmatprep.mubr.msk.f32.mxu1 %vm455_vm0, %v391_v18  ;;  %4571 = vmatprep.mubr.msk.f32.mxu0 %vm455_vm0, %v391_v18  ;;  %v5754_v13 = vld [vmem:[%s7273_s4] ss:$0 sm:$0xff] }
  0x67   : > { %4468 = vmatmul.mubr.msk.f32.gmra.mrb[36].mxu1 %vm455_vm0, %v392_v11  ;;  %4572 = vmatmul.mubr.msk.f32.gmra.mrb[36].mxu0 %vm455_vm0, %v392_v11  ;;  %v421_v11 = vand.u32 2147483647, %v5256_v21  ;;  %v425_v21 = vand.u32 2147483647, %v5296_v31  ;;  %v429_v31 = vand.u32 2147483647, %v5336_v39 }
  0x68   : > { %4470 = vmatprep.mubr.msk.f32.mxu1 %vm455_vm0, %v393_v20  ;;  %4574 = vmatprep.mubr.msk.f32.mxu0 %vm455_vm0, %v393_v20  ;;  %v433_v39 = vand.u32 2147483647, %v5376_v47  ;;  %v437_v47 = vand.u32 2147483647, %v5416_v55  ;;  %v441_v55 = vand.u32 2147483647, %v5456_v63 }
  0x69   : > { %v445_v63 = vand.u32 2147483647, %v5496_v7  ;;  %v7322_v7 = vld [vmem:[#allocation7_spill] sm:$0xff] }
  0x6a   : > { %v449_v22 = vand.u32 2147483647, %v7322_v7 }
  0x6b   : > { %4471 = vmatmul.mubr.msk.f32.gmra.mrb[38].mxu1 %vm455_vm0, %v394_v24  ;;  %4575 = vmatmul.mubr.msk.f32.gmra.mrb[38].mxu0 %vm455_vm0, %v394_v24 }
  0x6c   : > { %4473 = vmatprep.mubr.msk.f32.mxu1 %vm455_vm0, %v395_v26  ;;  %4577 = vmatprep.mubr.msk.f32.mxu0 %vm455_vm0, %v395_v26 }
  0x6f   : > { %4474 = vmatmul.mubr.msk.f32.gmra.mrb[40].mxu1 %vm455_vm0, %v396_v28  ;;  %4578 = vmatmul.mubr.msk.f32.gmra.mrb[40].mxu0 %vm455_vm0, %v396_v28 }
  0x70   : > { %4476 = vmatprep.mubr.msk.f32.mxu1 %vm455_vm0, %v397_v30  ;;  %4580 = vmatprep.mubr.msk.f32.mxu0 %vm455_vm0, %v397_v30 }
  0x73   : > { %4477 = vmatmul.mubr.msk.f32.gmra.mrb[42].mxu1 %vm455_vm0, %v398_v32  ;;  %4581 = vmatmul.mubr.msk.f32.gmra.mrb[42].mxu0 %vm455_vm0, %v398_v32 }
  0x74   : > { %4479 = vmatprep.mubr.msk.f32.mxu1 %vm455_vm0, %v399_v34  ;;  %4583 = vmatprep.mubr.msk.f32.mxu0 %vm455_vm0, %v399_v34 }
  0x77   : > { %4480 = vmatmul.mubr.msk.f32.gmra.mrb[44].mxu1 %vm455_vm0, %v400_v36  ;;  %4584 = vmatmul.mubr.msk.f32.gmra.mrb[44].mxu0 %vm455_vm0, %v400_v36 }
  0x78   : > { %4482 = vmatprep.mubr.msk.f32.mxu1 %vm455_vm0, %v401_v38  ;;  %4586 = vmatprep.mubr.msk.f32.mxu0 %vm455_vm0, %v401_v38 }
  0x7b   : > { %4483 = vmatmul.mubr.msk.f32.gmra.mrb[46].mxu1 %vm455_vm0, %v402_v40  ;;  %4587 = vmatmul.mubr.msk.f32.gmra.mrb[46].mxu0 %vm455_vm0, %v402_v40 }
  0x7c   : > { %4485 = vmatprep.mubr.msk.f32.mxu1 %vm455_vm0, %v403_v42  ;;  %4589 = vmatprep.mubr.msk.f32.mxu0 %vm455_vm0, %v403_v42 }
  0x7f   : > { %4486 = vmatmul.mubr.msk.f32.gmra.mrb[48].mxu1 %vm455_vm0, %v404_v44  ;;  %4590 = vmatmul.mubr.msk.f32.gmra.mrb[48].mxu0 %vm455_vm0, %v404_v44 }
  0x80   : > { %4488 = vmatprep.mubr.msk.f32.mxu1 %vm455_vm0, %v405_v46  ;;  %4592 = vmatprep.mubr.msk.f32.mxu0 %vm455_vm0, %v405_v46 }
  0x83   : > { %4489 = vmatmul.mubr.msk.f32.gmra.mrb[50].mxu1 %vm455_vm0, %v406_v48  ;;  %4593 = vmatmul.mubr.msk.f32.gmra.mrb[50].mxu0 %vm455_vm0, %v406_v48 }
  0x84   : > { %4491 = vmatprep.mubr.msk.f32.mxu1 %vm455_vm0, %v407_v50  ;;  %4595 = vmatprep.mubr.msk.f32.mxu0 %vm455_vm0, %v407_v50 }
  0x87   : > { %4492 = vmatmul.mubr.msk.f32.gmra.mrb[52].mxu1 %vm455_vm0, %v408_v52  ;;  %4596 = vmatmul.mubr.msk.f32.gmra.mrb[52].mxu0 %vm455_vm0, %v408_v52 }
  0x88   : > { %4494 = vmatprep.mubr.msk.f32.mxu1 %vm455_vm0, %v409_v54  ;;  %4598 = vmatprep.mubr.msk.f32.mxu0 %vm455_vm0, %v409_v54 }
  0x8b   : > { %4495 = vmatmul.mubr.msk.f32.gmra.mrb[54].mxu1 %vm455_vm0, %v410_v56  ;;  %4599 = vmatmul.mubr.msk.f32.gmra.mrb[54].mxu0 %vm455_vm0, %v410_v56 }
  0x8c   : > { %4497 = vmatprep.mubr.msk.f32.mxu1 %vm455_vm0, %v411_v58  ;;  %4601 = vmatprep.mubr.msk.f32.mxu0 %vm455_vm0, %v411_v58 }
  0x8f   : > { %4498 = vmatmul.mubr.msk.f32.gmra.mrb[56].mxu1 %vm455_vm0, %v412_v60  ;;  %4602 = vmatmul.mubr.msk.f32.gmra.mrb[56].mxu0 %vm455_vm0, %v412_v60 }
  0x90   : > { %4500 = vmatprep.mubr.msk.f32.mxu1 %vm455_vm0, %v413_v62  ;;  %4604 = vmatprep.mubr.msk.f32.mxu0 %vm455_vm0, %v413_v62 }
  0x93   : > { %4501 = vmatmul.mubr.msk.f32.gmra.mrb[58].mxu1 %vm455_vm0, %v414_v0  ;;  %4605 = vmatmul.mubr.msk.f32.gmra.mrb[58].mxu0 %vm455_vm0, %v414_v0 }
  0x94   : > { %4503 = vmatprep.mubr.msk.f32.mxu1 %vm455_vm0, %v415_v2  ;;  %4607 = vmatprep.mubr.msk.f32.mxu0 %vm455_vm0, %v415_v2 }
  0x97   : > { %4504 = vmatmul.mubr.msk.f32.gmra.mrb[60].mxu1 %vm455_vm0, %v416_v4  ;;  %4608 = vmatmul.mubr.msk.f32.gmra.mrb[60].mxu0 %vm455_vm0, %v416_v4 }
  0x98   : > { %4506 = vmatprep.mubr.msk.f32.mxu1 %vm455_vm0, %v417_v6  ;;  %4610 = vmatprep.mubr.msk.f32.mxu0 %vm455_vm0, %v417_v6 }
  0x9b   : > { %4507 = vmatmul.mubr.msk.f32.gmra.mrb[62].mxu1 %vm455_vm0, %v418_v8  ;;  %4611 = vmatmul.mubr.msk.f32.gmra.mrb[62].mxu0 %vm455_vm0, %v418_v8 }
  0x9c   : > { %4509 = vmatprep.mubr.msk.f32.mxu1 %vm455_vm0, %v419_v9  ;;  %4613 = vmatprep.mubr.msk.f32.mxu0 %vm455_vm0, %v419_v9 }
  0x9f   : > { %4510 = vmatmul.mubr.msk.f32.gmra.mrb[64].mxu1 %vm455_vm0, %v420_v10  ;;  %4614 = vmatmul.mubr.msk.f32.gmra.mrb[64].mxu0 %vm455_vm0, %v420_v10 }
  0xa0   : > { %4512 = vmatprep.mubr.msk.f32.mxu1 %vm455_vm0, %v421_v11  ;;  %4616 = vmatprep.mubr.msk.f32.mxu0 %vm455_vm0, %v421_v11 }
  0xa3   : > { %4513 = vmatmul.mubr.msk.f32.gmra.mrb[66].mxu1 %vm455_vm0, %v422_v12  ;;  %4617 = vmatmul.mubr.msk.f32.gmra.mrb[66].mxu0 %vm455_vm0, %v422_v12 }
  0xa4   : > { %4515 = vmatprep.mubr.msk.f32.mxu1 %vm455_vm0, %v423_v16  ;;  %4619 = vmatprep.mubr.msk.f32.mxu0 %vm455_vm0, %v423_v16 }
  0xa7   : > { %4516 = vmatmul.mubr.msk.f32.gmra.mrb[68].mxu1 %vm455_vm0, %v424_v19  ;;  %4620 = vmatmul.mubr.msk.f32.gmra.mrb[68].mxu0 %vm455_vm0, %v424_v19 }
  0xa8   : > { %4518 = vmatprep.mubr.msk.f32.mxu1 %vm455_vm0, %v425_v21  ;;  %4622 = vmatprep.mubr.msk.f32.mxu0 %vm455_vm0, %v425_v21 }
  0xab   : > { %4519 = vmatmul.mubr.msk.f32.gmra.mrb[70].mxu1 %vm455_vm0, %v426_v25  ;;  %4623 = vmatmul.mubr.msk.f32.gmra.mrb[70].mxu0 %vm455_vm0, %v426_v25 }
  0xac   : > { %4521 = vmatprep.mubr.msk.f32.mxu1 %vm455_vm0, %v427_v27  ;;  %4625 = vmatprep.mubr.msk.f32.mxu0 %vm455_vm0, %v427_v27 }
  0xaf   : > { %4522 = vmatmul.mubr.msk.f32.gmra.mrb[72].mxu1 %vm455_vm0, %v428_v29  ;;  %4626 = vmatmul.mubr.msk.f32.gmra.mrb[72].mxu0 %vm455_vm0, %v428_v29 }
  0xb0   : > { %4524 = vmatprep.mubr.msk.f32.mxu1 %vm455_vm0, %v429_v31  ;;  %4628 = vmatprep.mubr.msk.f32.mxu0 %vm455_vm0, %v429_v31 }
  0xb3   : > { %4525 = vmatmul.mubr.msk.f32.gmra.mrb[74].mxu1 %vm455_vm0, %v430_v33  ;;  %4629 = vmatmul.mubr.msk.f32.gmra.mrb[74].mxu0 %vm455_vm0, %v430_v33 }
  0xb4   : > { %4527 = vmatprep.mubr.msk.f32.mxu1 %vm455_vm0, %v431_v35  ;;  %4631 = vmatprep.mubr.msk.f32.mxu0 %vm455_vm0, %v431_v35 }
  0xb7   : > { %4528 = vmatmul.mubr.msk.f32.gmra.mrb[76].mxu1 %vm455_vm0, %v432_v37  ;;  %4632 = vmatmul.mubr.msk.f32.gmra.mrb[76].mxu0 %vm455_vm0, %v432_v37 }
  0xb8   : > { %4530 = vmatprep.mubr.msk.f32.mxu1 %vm455_vm0, %v433_v39  ;;  %4634 = vmatprep.mubr.msk.f32.mxu0 %vm455_vm0, %v433_v39 }
  0xbb   : > { %4531 = vmatmul.mubr.msk.f32.gmra.mrb[78].mxu1 %vm455_vm0, %v434_v41  ;;  %4635 = vmatmul.mubr.msk.f32.gmra.mrb[78].mxu0 %vm455_vm0, %v434_v41 }
  0xbc   : > { %4533 = vmatprep.mubr.msk.f32.mxu1 %vm455_vm0, %v435_v43  ;;  %4637 = vmatprep.mubr.msk.f32.mxu0 %vm455_vm0, %v435_v43 }
  0xbf   : > { %4534 = vmatmul.mubr.msk.f32.gmra.mrb[80].mxu1 %vm455_vm0, %v436_v45  ;;  %4638 = vmatmul.mubr.msk.f32.gmra.mrb[80].mxu0 %vm455_vm0, %v436_v45 }
  0xc0   : > { %4536 = vmatprep.mubr.msk.f32.mxu1 %vm455_vm0, %v437_v47  ;;  %4640 = vmatprep.mubr.msk.f32.mxu0 %vm455_vm0, %v437_v47 }
  0xc3   : > { %4537 = vmatmul.mubr.msk.f32.gmra.mrb[82].mxu1 %vm455_vm0, %v438_v49  ;;  %4641 = vmatmul.mubr.msk.f32.gmra.mrb[82].mxu0 %vm455_vm0, %v438_v49 }
  0xc4   : > { %4539 = vmatprep.mubr.msk.f32.mxu1 %vm455_vm0, %v439_v51  ;;  %4643 = vmatprep.mubr.msk.f32.mxu0 %vm455_vm0, %v439_v51 }
  0xc7   : > { %4540 = vmatmul.mubr.msk.f32.gmra.mrb[84].mxu1 %vm455_vm0, %v440_v53  ;;  %4644 = vmatmul.mubr.msk.f32.gmra.mrb[84].mxu0 %vm455_vm0, %v440_v53 }
  0xc8   : > { %4542 = vmatprep.mubr.msk.f32.mxu1 %vm455_vm0, %v441_v55  ;;  %4646 = vmatprep.mubr.msk.f32.mxu0 %vm455_vm0, %v441_v55 }
  0xcb   : > { %4543 = vmatmul.mubr.msk.f32.gmra.mrb[86].mxu1 %vm455_vm0, %v442_v57  ;;  %4647 = vmatmul.mubr.msk.f32.gmra.mrb[86].mxu0 %vm455_vm0, %v442_v57 }
  0xcc   : > { %4545 = vmatprep.mubr.msk.f32.mxu1 %vm455_vm0, %v443_v59  ;;  %4649 = vmatprep.mubr.msk.f32.mxu0 %vm455_vm0, %v443_v59 }
  0xcf   : > { %4546 = vmatmul.mubr.msk.f32.gmra.mrb[88].mxu1 %vm455_vm0, %v444_v61  ;;  %4650 = vmatmul.mubr.msk.f32.gmra.mrb[88].mxu0 %vm455_vm0, %v444_v61 }
  0xd0   : > { %4548 = vmatprep.mubr.msk.f32.mxu1 %vm455_vm0, %v445_v63  ;;  %4652 = vmatprep.mubr.msk.f32.mxu0 %vm455_vm0, %v445_v63 }
  0xd3   : > { %4549 = vmatmul.mubr.msk.f32.gmra.mrb[90].mxu1 %vm455_vm0, %v446_v14  ;;  %4653 = vmatmul.mubr.msk.f32.gmra.mrb[90].mxu0 %vm455_vm0, %v446_v14 }
  0xd4   : > { %4551 = vmatprep.mubr.msk.f32.mxu1 %vm455_vm0, %v447_v17  ;;  %4655 = vmatprep.mubr.msk.f32.mxu0 %vm455_vm0, %v447_v17 }
  0xd7   : > { %4552 = vmatmul.mubr.msk.f32.gmra.mrb[92].mxu1 %vm455_vm0, %v448_v5  ;;  %4656 = vmatmul.mubr.msk.f32.gmra.mrb[92].mxu0 %vm455_vm0, %v448_v5 }
  0xd8   : > { %4554 = vmatprep.mubr.msk.f32.mxu1 %vm455_vm0, %v449_v22  ;;  %4658 = vmatprep.mubr.msk.f32.mxu0 %vm455_vm0, %v449_v22 }
  0xdb   : > { %4555 = vmatmul.mubr.msk.f32.gmra.mrb[94].mxu1 %vm455_vm0, %v450_v15  ;;  %4659 = vmatmul.mubr.msk.f32.gmra.mrb[94].mxu0 %vm455_vm0, %v450_v15 }
  0xf2   : > { %v5756_v18 = vpop.f32.mrb[0].mxu0  ;;  %v5758_v20 = vpop.f32.mrb[0].mxu1 }
  0xf3   : > { %v2009_v24 = vadd.f32 %v5756_v18, %v5754_v13  ;;  %v2041_v26 = vadd.f32 %v5758_v20, %v5754_v13  ;;  %v5764_v28 = vpop.f32.mrb[1].mxu0  ;;  %v5766_v30 = vpop.f32.mrb[1].mxu1 }
  0xf4   : > { %v2008_v32 = vadd.f32 %v5754_v13, %v5764_v28  ;;  %v2040_v34 = vadd.f32 %v5754_v13, %v5766_v30 }
  0xf5   : > { %2073 = vst.msk [vmem:[%s5773_s24 + $0x8] sm:$0xff] %vm455_vm0, %v2009_v24  ;;  %2105 = vst.msk [vmem:[%s5773_s24 + $0x108] sm:$0xff] %vm455_vm0, %v2041_v26 }
  0xf6   : > { %2072 = vst.msk [vmem:[%s5773_s24] sm:$0xff] %vm455_vm0, %v2008_v32  ;;  %2104 = vst.msk [vmem:[%s5773_s24 + $0x100] sm:$0xff] %vm455_vm0, %v2040_v34  ;;  %v5783_v36 = vpop.f32.mrb[2].mxu0  ;;  %v5785_v38 = vpop.f32.mrb[2].mxu1 }
  0xf7   : > { %v2011_v40 = vadd.f32 %v5783_v36, %v5754_v13  ;;  %v2043_v42 = vadd.f32 %v5785_v38, %v5754_v13  ;;  %v5791_v44 = vpop.f32.mrb[3].mxu0  ;;  %v5793_v46 = vpop.f32.mrb[3].mxu1 }
  0xf8   : > { %v2010_v48 = vadd.f32 %v5754_v13, %v5791_v44  ;;  %v2042_v50 = vadd.f32 %v5754_v13, %v5793_v46 }
  0xf9   : > { %2075 = vst.msk [vmem:[%s5773_s24 + $0x18] sm:$0xff] %vm455_vm0, %v2011_v40  ;;  %2107 = vst.msk [vmem:[%s5773_s24 + $0x118] sm:$0xff] %vm455_vm0, %v2043_v42 }
  0xfa   : > { %2074 = vst.msk [vmem:[%s5773_s24 + $0x10] sm:$0xff] %vm455_vm0, %v2010_v48  ;;  %2106 = vst.msk [vmem:[%s5773_s24 + $0x110] sm:$0xff] %vm455_vm0, %v2042_v50  ;;  %v5807_v52 = vpop.f32.mrb[4].mxu0  ;;  %v5809_v54 = vpop.f32.mrb[4].mxu1 }
  0xfb   : > { %v2013_v56 = vadd.f32 %v5807_v52, %v5754_v13  ;;  %v2045_v58 = vadd.f32 %v5809_v54, %v5754_v13  ;;  %v5815_v60 = vpop.f32.mrb[5].mxu0  ;;  %v5817_v62 = vpop.f32.mrb[5].mxu1 }
  0xfc   : > { %v2012_v0 = vadd.f32 %v5754_v13, %v5815_v60  ;;  %v2044_v2 = vadd.f32 %v5754_v13, %v5817_v62 }
  0xfd   : > { %2077 = vst.msk [vmem:[%s5773_s24 + $0x28] sm:$0xff] %vm455_vm0, %v2013_v56  ;;  %2109 = vst.msk [vmem:[%s5773_s24 + $0x128] sm:$0xff] %vm455_vm0, %v2045_v58 }
  0xfe   : > { %2076 = vst.msk [vmem:[%s5773_s24 + $0x20] sm:$0xff] %vm455_vm0, %v2012_v0  ;;  %2108 = vst.msk [vmem:[%s5773_s24 + $0x120] sm:$0xff] %vm455_vm0, %v2044_v2  ;;  %v5831_v4 = vpop.f32.mrb[6].mxu0  ;;  %v5833_v6 = vpop.f32.mrb[6].mxu1 }
  0xff   : > { %v2015_v8 = vadd.f32 %v5831_v4, %v5754_v13  ;;  %v2047_v9 = vadd.f32 %v5833_v6, %v5754_v13  ;;  %v5839_v10 = vpop.f32.mrb[7].mxu0  ;;  %v5841_v11 = vpop.f32.mrb[7].mxu1 }
 0x100   : > { %v2014_v12 = vadd.f32 %v5754_v13, %v5839_v10  ;;  %v2046_v16 = vadd.f32 %v5754_v13, %v5841_v11 }
 0x101   : > { %2079 = vst.msk [vmem:[%s5773_s24 + $0x38] sm:$0xff] %vm455_vm0, %v2015_v8  ;;  %2111 = vst.msk [vmem:[%s5773_s24 + $0x138] sm:$0xff] %vm455_vm0, %v2047_v9 }
 0x102   : > { %2078 = vst.msk [vmem:[%s5773_s24 + $0x30] sm:$0xff] %vm455_vm0, %v2014_v12  ;;  %2110 = vst.msk [vmem:[%s5773_s24 + $0x130] sm:$0xff] %vm455_vm0, %v2046_v16  ;;  %v5855_v19 = vpop.f32.mrb[8].mxu0  ;;  %v5857_v21 = vpop.f32.mrb[8].mxu1 }
 0x103   : > { %v2017_v25 = vadd.f32 %v5855_v19, %v5754_v13  ;;  %v2049_v27 = vadd.f32 %v5857_v21, %v5754_v13  ;;  %v5863_v29 = vpop.f32.mrb[9].mxu0  ;;  %v5865_v31 = vpop.f32.mrb[9].mxu1 }
 0x104   : > { %v2016_v33 = vadd.f32 %v5754_v13, %v5863_v29  ;;  %v2048_v35 = vadd.f32 %v5754_v13, %v5865_v31 }
 0x105   : > { %2081 = vst.msk [vmem:[%s5773_s24 + $0x48] sm:$0xff] %vm455_vm0, %v2017_v25  ;;  %2113 = vst.msk [vmem:[%s5773_s24 + $0x148] sm:$0xff] %vm455_vm0, %v2049_v27 }
 0x106   : > { %2080 = vst.msk [vmem:[%s5773_s24 + $0x40] sm:$0xff] %vm455_vm0, %v2016_v33  ;;  %2112 = vst.msk [vmem:[%s5773_s24 + $0x140] sm:$0xff] %vm455_vm0, %v2048_v35  ;;  %v5879_v37 = vpop.f32.mrb[10].mxu0  ;;  %v5881_v39 = vpop.f32.mrb[10].mxu1 }
 0x107   : > { %v2019_v41 = vadd.f32 %v5879_v37, %v5754_v13  ;;  %v2051_v43 = vadd.f32 %v5881_v39, %v5754_v13  ;;  %v5887_v45 = vpop.f32.mrb[11].mxu0  ;;  %v5889_v47 = vpop.f32.mrb[11].mxu1 }
 0x108   : > { %v2018_v49 = vadd.f32 %v5754_v13, %v5887_v45  ;;  %v2050_v51 = vadd.f32 %v5754_v13, %v5889_v47 }
 0x109   : > { %2083 = vst.msk [vmem:[%s5773_s24 + $0x58] sm:$0xff] %vm455_vm0, %v2019_v41  ;;  %2115 = vst.msk [vmem:[%s5773_s24 + $0x158] sm:$0xff] %vm455_vm0, %v2051_v43 }
 0x10a   : > { %2082 = vst.msk [vmem:[%s5773_s24 + $0x50] sm:$0xff] %vm455_vm0, %v2018_v49  ;;  %2114 = vst.msk [vmem:[%s5773_s24 + $0x150] sm:$0xff] %vm455_vm0, %v2050_v51  ;;  %v5903_v53 = vpop.f32.mrb[12].mxu0  ;;  %v5905_v55 = vpop.f32.mrb[12].mxu1 }
 0x10b   : > { %v2021_v57 = vadd.f32 %v5903_v53, %v5754_v13  ;;  %v2053_v59 = vadd.f32 %v5905_v55, %v5754_v13  ;;  %v5911_v61 = vpop.f32.mrb[13].mxu0  ;;  %v5913_v63 = vpop.f32.mrb[13].mxu1 }
 0x10c   : > { %v2020_v1 = vadd.f32 %v5754_v13, %v5911_v61  ;;  %v2052_v14 = vadd.f32 %v5754_v13, %v5913_v63 }
 0x10d   : > { %2085 = vst.msk [vmem:[%s5773_s24 + $0x68] sm:$0xff] %vm455_vm0, %v2021_v57  ;;  %2117 = vst.msk [vmem:[%s5773_s24 + $0x168] sm:$0xff] %vm455_vm0, %v2053_v59 }
 0x10e   : > { %2084 = vst.msk [vmem:[%s5773_s24 + $0x60] sm:$0xff] %vm455_vm0, %v2020_v1  ;;  %2116 = vst.msk [vmem:[%s5773_s24 + $0x160] sm:$0xff] %vm455_vm0, %v2052_v14  ;;  %v5927_v3 = vpop.f32.mrb[14].mxu0  ;;  %v5929_v17 = vpop.f32.mrb[14].mxu1 }
 0x10f   : > { %v2023_v5 = vadd.f32 %v5927_v3, %v5754_v13  ;;  %v2055_v7 = vadd.f32 %v5929_v17, %v5754_v13  ;;  %v5935_v22 = vpop.f32.mrb[15].mxu0  ;;  %v5937_v23 = vpop.f32.mrb[15].mxu1 }
 0x110   : > { %v2022_v15 = vadd.f32 %v5754_v13, %v5935_v22  ;;  %v2054_v24 = vadd.f32 %v5754_v13, %v5937_v23 }
 0x111   : > { %2087 = vst.msk [vmem:[%s5773_s24 + $0x78] sm:$0xff] %vm455_vm0, %v2023_v5  ;;  %2119 = vst.msk [vmem:[%s5773_s24 + $0x178] sm:$0xff] %vm455_vm0, %v2055_v7 }
 0x112   : > { %2086 = vst.msk [vmem:[%s5773_s24 + $0x70] sm:$0xff] %vm455_vm0, %v2022_v15  ;;  %2118 = vst.msk [vmem:[%s5773_s24 + $0x170] sm:$0xff] %vm455_vm0, %v2054_v24  ;;  %v5951_v26 = vpop.f32.mrb[16].mxu0  ;;  %v5953_v32 = vpop.f32.mrb[16].mxu1 }
 0x113   : > { %7324 = vst [vmem:[#allocation5_spill] sm:$0xff] %v5953_v32  ;;  %v2025_v34 = vadd.f32 %v5951_v26, %v5754_v13  ;;  %v2057_v40 = vadd.f32 %v5953_v32, %v5754_v13  ;;  %v5959_v42 = vpop.f32.mrb[17].mxu0  ;;  %v5961_v48 = vpop.f32.mrb[17].mxu1 }
 0x114   : > { %7325 = vst [vmem:[#allocation6_spill] sm:$0xff] %v5961_v48  ;;  %v2024_v50 = vadd.f32 %v5754_v13, %v5959_v42  ;;  %v2056_v56 = vadd.f32 %v5754_v13, %v5961_v48 }
 0x115   : > { %2089 = vst.msk [vmem:[%s5773_s24 + $0x88] sm:$0xff] %vm455_vm0, %v2025_v34  ;;  %2121 = vst.msk [vmem:[%s5773_s24 + $0x188] sm:$0xff] %vm455_vm0, %v2057_v40 }
 0x116   : > { %2088 = vst.msk [vmem:[%s5773_s24 + $0x80] sm:$0xff] %vm455_vm0, %v2024_v50  ;;  %2120 = vst.msk [vmem:[%s5773_s24 + $0x180] sm:$0xff] %vm455_vm0, %v2056_v56  ;;  %v5975_v58 = vpop.f32.mrb[18].mxu0  ;;  %v5977_v0 = vpop.f32.mrb[18].mxu1 }
 0x117   : > { %7326 = vst [vmem:[#allocation7_spill] sm:$0xff] %v5977_v0  ;;  %v2027_v2 = vadd.f32 %v5975_v58, %v5754_v13  ;;  %v2059_v8 = vadd.f32 %v5977_v0, %v5754_v13  ;;  %v5983_v9 = vpop.f32.mrb[19].mxu0  ;;  %v5985_v12 = vpop.f32.mrb[19].mxu1 }
 0x118   : > { %7327 = vst [vmem:[#allocation8_spill] sm:$0xff] %v5985_v12  ;;  %v2026_v16 = vadd.f32 %v5754_v13, %v5983_v9  ;;  %v2058_v25 = vadd.f32 %v5754_v13, %v5985_v12 }
 0x119   : > { %2091 = vst.msk [vmem:[%s5773_s24 + $0x98] sm:$0xff] %vm455_vm0, %v2027_v2  ;;  %2123 = vst.msk [vmem:[%s5773_s24 + $0x198] sm:$0xff] %vm455_vm0, %v2059_v8 }
 0x11a   : > { %2090 = vst.msk [vmem:[%s5773_s24 + $0x90] sm:$0xff] %vm455_vm0, %v2026_v16  ;;  %2122 = vst.msk [vmem:[%s5773_s24 + $0x190] sm:$0xff] %vm455_vm0, %v2058_v25  ;;  %v5999_v27 = vpop.f32.mrb[20].mxu0  ;;  %v6001_v33 = vpop.f32.mrb[20].mxu1 }
 0x11b   : > { %7328 = vst [vmem:[#allocation9_spill] sm:$0xff] %v6001_v33  ;;  %v2029_v35 = vadd.f32 %v5999_v27, %v5754_v13  ;;  %v2061_v41 = vadd.f32 %v6001_v33, %v5754_v13  ;;  %v6007_v43 = vpop.f32.mrb[21].mxu0  ;;  %v6009_v49 = vpop.f32.mrb[21].mxu1 }
 0x11c   : > { %7329 = vst [vmem:[#allocation10_spill] sm:$0xff] %v6009_v49  ;;  %v2028_v51 = vadd.f32 %v5754_v13, %v6007_v43  ;;  %v2060_v57 = vadd.f32 %v5754_v13, %v6009_v49 }
 0x11d   : > { %2093 = vst.msk [vmem:[%s5773_s24 + $0xa8] sm:$0xff] %vm455_vm0, %v2029_v35  ;;  %2125 = vst.msk [vmem:[%s5773_s24 + $0x1a8] sm:$0xff] %vm455_vm0, %v2061_v41 }
 0x11e   : > { %2092 = vst.msk [vmem:[%s5773_s24 + $0xa0] sm:$0xff] %vm455_vm0, %v2028_v51  ;;  %2124 = vst.msk [vmem:[%s5773_s24 + $0x1a0] sm:$0xff] %vm455_vm0, %v2060_v57  ;;  %v6023_v59 = vpop.f32.mrb[22].mxu0  ;;  %v6025_v1 = vpop.f32.mrb[22].mxu1 }
 0x11f   : > { %7330 = vst [vmem:[#allocation11_spill] sm:$0xff] %v6025_v1  ;;  %v2031_v14 = vadd.f32 %v6023_v59, %v5754_v13  ;;  %v2063_v5 = vadd.f32 %v6025_v1, %v5754_v13  ;;  %v6031_v7 = vpop.f32.mrb[23].mxu0  ;;  %v6033_v15 = vpop.f32.mrb[23].mxu1 }
 0x120   : > { %7331 = vst [vmem:[#allocation12_spill] sm:$0xff] %v6033_v15  ;;  %v2030_v24 = vadd.f32 %v5754_v13, %v6031_v7  ;;  %v2062_v34 = vadd.f32 %v5754_v13, %v6033_v15 }
 0x121   : > { %2095 = vst.msk [vmem:[%s5773_s24 + $0xb8] sm:$0xff] %vm455_vm0, %v2031_v14  ;;  %2127 = vst.msk [vmem:[%s5773_s24 + $0x1b8] sm:$0xff] %vm455_vm0, %v2063_v5 }
 0x122   : > { %2094 = vst.msk [vmem:[%s5773_s24 + $0xb0] sm:$0xff] %vm455_vm0, %v2030_v24  ;;  %2126 = vst.msk [vmem:[%s5773_s24 + $0x1b0] sm:$0xff] %vm455_vm0, %v2062_v34  ;;  %v6047_v40 = vpop.f32.mrb[24].mxu0  ;;  %v6049_v50 = vpop.f32.mrb[24].mxu1 }
 0x123   : > { %7332 = vst [vmem:[#allocation13_spill] sm:$0xff] %v6049_v50  ;;  %v2033_v56 = vadd.f32 %v6047_v40, %v5754_v13  ;;  %v2065_v2 = vadd.f32 %v6049_v50, %v5754_v13  ;;  %v6055_v8 = vpop.f32.mrb[25].mxu0  ;;  %v6057_v16 = vpop.f32.mrb[25].mxu1 }
 0x124   : > { %7333 = vst [vmem:[#allocation14_spill] sm:$0xff] %v6057_v16  ;;  %v2032_v25 = vadd.f32 %v5754_v13, %v6055_v8  ;;  %v2064_v35 = vadd.f32 %v5754_v13, %v6057_v16 }
 0x125   : > { %2097 = vst.msk [vmem:[%s5773_s24 + $0xc8] sm:$0xff] %vm455_vm0, %v2033_v56  ;;  %2129 = vst.msk [vmem:[%s5773_s24 + $0x1c8] sm:$0xff] %vm455_vm0, %v2065_v2 }
 0x126   : > { %2096 = vst.msk [vmem:[%s5773_s24 + $0xc0] sm:$0xff] %vm455_vm0, %v2032_v25  ;;  %2128 = vst.msk [vmem:[%s5773_s24 + $0x1c0] sm:$0xff] %vm455_vm0, %v2064_v35  ;;  %v6071_v41 = vpop.f32.mrb[26].mxu0  ;;  %v6073_v51 = vpop.f32.mrb[26].mxu1 }
 0x127   : > { %7334 = vst [vmem:[#allocation15_spill] sm:$0xff] %v6073_v51  ;;  %v2035_v57 = vadd.f32 %v6071_v41, %v5754_v13  ;;  %v2067_v14 = vadd.f32 %v6073_v51, %v5754_v13  ;;  %v6079_v5 = vpop.f32.mrb[27].mxu0  ;;  %v6081_v24 = vpop.f32.mrb[27].mxu1 }
 0x128   : > { %7335 = vst [vmem:[#allocation16_spill] sm:$0xff] %v6081_v24  ;;  %v2034_v34 = vadd.f32 %v5754_v13, %v6079_v5  ;;  %v2066_v56 = vadd.f32 %v5754_v13, %v6081_v24 }
 0x129   : > { %2099 = vst.msk [vmem:[%s5773_s24 + $0xd8] sm:$0xff] %vm455_vm0, %v2035_v57  ;;  %2131 = vst.msk [vmem:[%s5773_s24 + $0x1d8] sm:$0xff] %vm455_vm0, %v2067_v14 }
 0x12a   : > { %2098 = vst.msk [vmem:[%s5773_s24 + $0xd0] sm:$0xff] %vm455_vm0, %v2034_v34  ;;  %2130 = vst.msk [vmem:[%s5773_s24 + $0x1d0] sm:$0xff] %vm455_vm0, %v2066_v56  ;;  %v6095_v2 = vpop.f32.mrb[28].mxu0  ;;  %v6097_v25 = vpop.f32.mrb[28].mxu1 }
 0x12b   : > { %7336 = vst [vmem:[#allocation17_spill] sm:$0xff] %v6097_v25  ;;  %v2037_v35 = vadd.f32 %v6095_v2, %v5754_v13  ;;  %v2069_v51 = vadd.f32 %v6097_v25, %v5754_v13  ;;  %v6103_v24 = vpop.f32.mrb[29].mxu0  ;;  %v6105_v57 = vpop.f32.mrb[29].mxu1 }
 0x12c   : > { %7337 = vst [vmem:[#allocation18_spill] sm:$0xff] %v6105_v57  ;;  %v2036_v14 = vadd.f32 %v5754_v13, %v6103_v24  ;;  %v2068_v34 = vadd.f32 %v5754_v13, %v6105_v57 }
 0x12d   : > { %2101 = vst.msk [vmem:[%s5773_s24 + $0xe8] sm:$0xff] %vm455_vm0, %v2037_v35  ;;  %2133 = vst.msk [vmem:[%s5773_s24 + $0x1e8] sm:$0xff] %vm455_vm0, %v2069_v51 }
 0x12e   : > { %2100 = vst.msk [vmem:[%s5773_s24 + $0xe0] sm:$0xff] %vm455_vm0, %v2036_v14  ;;  %2132 = vst.msk [vmem:[%s5773_s24 + $0x1e0] sm:$0xff] %vm455_vm0, %v2068_v34  ;;  %v6119_v56 = vpop.f32.mrb[30].mxu0  ;;  %v6121_v25 = vpop.f32.mrb[30].mxu1  ;;  %v6146_v34 = vld [vmem:[%s7273_s4 + $0x1] ss:$0 sm:$0xff] }
 0x12f   : > { %7338 = vst [vmem:[#allocation19_spill] sm:$0xff] %v6121_v25  ;;  %v2039_v16 = vadd.f32 %v6119_v56, %v5754_v13  ;;  %v2071_v50 = vadd.f32 %v6121_v25, %v5754_v13  ;;  %v6127_v57 = vpop.f32.mrb[31].mxu0  ;;  %v6129_v15 = vpop.f32.mrb[31].mxu1 }
 0x130   : > { %7339 = vst [vmem:[#allocation20_spill] sm:$0xff] %v6129_v15  ;;  %v2038_v51 = vadd.f32 %v5754_v13, %v6127_v57  ;;  %v2070_v35 = vadd.f32 %v5754_v13, %v6129_v15  ;;  %v6151_v13 = vld [vmem:[%s7273_s4 + $0x2] ss:$0 sm:$0xff] }
 0x131   : > { %2103 = vst.msk [vmem:[%s5773_s24 + $0xf8] sm:$0xff] %vm455_vm0, %v2039_v16  ;;  %2135 = vst.msk [vmem:[%s5773_s24 + $0x1f8] sm:$0xff] %vm455_vm0, %v2071_v50 }
 0x132   : > { %2102 = vst.msk [vmem:[%s5773_s24 + $0xf0] sm:$0xff] %vm455_vm0, %v2038_v51  ;;  %2134 = vst.msk [vmem:[%s5773_s24 + $0x1f0] sm:$0xff] %vm455_vm0, %v2070_v35  ;;  %v4463_v14 = vpop.f32.mrb[32].mxu1  ;;  %v4567_v25 = vpop.f32.mrb[32].mxu0 }
 0x133   : > { %v2137_v50 = vadd.f32 %v4463_v14, %v5756_v18  ;;  %v2334_v16 = vadd.f32 %v4567_v25, %v5756_v18  ;;  %v1295_v51 = vpop.f32.mrb[33].mxu1  ;;  %v1684_v35 = vpop.f32.mrb[33].mxu0 }
 0x134   : > { %v2136_v15 = vadd.f32 %v1295_v51, %v5764_v28  ;;  %v2333_v1 = vadd.f32 %v1684_v35, %v5764_v28 }
 0x135   : > { %v2206_v49 = vadd.f32 %v6146_v34, %v2137_v50  ;;  %v2403_v33 = vadd.f32 %v6151_v13, %v2334_v16 }
 0x136   : > { %v2205_v12 = vadd.f32 %v6146_v34, %v2136_v15  ;;  %v2402_v0 = vadd.f32 %v6151_v13, %v2333_v1  ;;  %v4466_v48 = vpop.f32.mrb[34].mxu1  ;;  %v4570_v32 = vpop.f32.mrb[34].mxu0 }
 0x137   : > { %2270 = vst.msk [vmem:[%s6162_s15 + $0x8] sm:$0xff] %vm455_vm0, %v2206_v49  ;;  %2467 = vst.msk [vmem:[%s6167_s17 + $0x8] sm:$0xff] %vm455_vm0, %v2403_v33  ;;  %v2139_v18 = vadd.f32 %v4466_v48, %v5783_v36  ;;  %v2336_v28 = vadd.f32 %v4570_v32, %v5783_v36  ;;  %v1305_v1 = vpop.f32.mrb[35].mxu1  ;;  %v1694_v15 = vpop.f32.mrb[35].mxu0 }
 0x138   : > { %2269 = vst.msk [vmem:[%s6162_s15] sm:$0xff] %vm455_vm0, %v2205_v12  ;;  %2466 = vst.msk [vmem:[%s6167_s17] sm:$0xff] %vm455_vm0, %v2402_v0  ;;  %v2138_v49 = vadd.f32 %v1305_v1, %v5791_v44  ;;  %v2335_v25 = vadd.f32 %v1694_v15, %v5791_v44 }
 0x139   : > { %v2208_v14 = vadd.f32 %v6146_v34, %v2139_v18  ;;  %v2405_v33 = vadd.f32 %v6151_v13, %v2336_v28 }
 0x13a   : > { %v2207_v48 = vadd.f32 %v6146_v34, %v2138_v49  ;;  %v2404_v36 = vadd.f32 %v6151_v13, %v2335_v25  ;;  %v4469_v32 = vpop.f32.mrb[36].mxu1  ;;  %v4573_v50 = vpop.f32.mrb[36].mxu0 }
 0x13b   : > { %2272 = vst.msk [vmem:[%s6162_s15 + $0x18] sm:$0xff] %vm455_vm0, %v2208_v14  ;;  %2469 = vst.msk [vmem:[%s6167_s17 + $0x18] sm:$0xff] %vm455_vm0, %v2405_v33  ;;  %v2141_v0 = vadd.f32 %v4469_v32, %v5807_v52  ;;  %v2338_v44 = vadd.f32 %v4573_v50, %v5807_v52  ;;  %v1315_v12 = vpop.f32.mrb[37].mxu1  ;;  %v1704_v16 = vpop.f32.mrb[37].mxu0 }
 0x13c   : > { %2271 = vst.msk [vmem:[%s6162_s15 + $0x10] sm:$0xff] %vm455_vm0, %v2207_v48  ;;  %2468 = vst.msk [vmem:[%s6167_s17 + $0x10] sm:$0xff] %vm455_vm0, %v2404_v36  ;;  %v2140_v51 = vadd.f32 %v1315_v12, %v5815_v60  ;;  %v2337_v35 = vadd.f32 %v1704_v16, %v5815_v60 }
 0x13d   : > { %v2210_v18 = vadd.f32 %v6146_v34, %v2141_v0  ;;  %v2407_v28 = vadd.f32 %v6151_v13, %v2338_v44 }
 0x13e   : > { %v2209_v1 = vadd.f32 %v6146_v34, %v2140_v51  ;;  %v2406_v52 = vadd.f32 %v6151_v13, %v2337_v35  ;;  %v4472_v15 = vpop.f32.mrb[38].mxu1  ;;  %v4576_v49 = vpop.f32.mrb[38].mxu0 }
 0x13f   : > { %2274 = vst.msk [vmem:[%s6162_s15 + $0x28] sm:$0xff] %vm455_vm0, %v2210_v18  ;;  %2471 = vst.msk [vmem:[%s6167_s17 + $0x28] sm:$0xff] %vm455_vm0, %v2407_v28  ;;  %v2143_v25 = vadd.f32 %v4472_v15, %v5831_v4  ;;  %v2340_v60 = vadd.f32 %v4576_v49, %v5831_v4  ;;  %v1325_v14 = vpop.f32.mrb[39].mxu1  ;;  %v1714_v33 = vpop.f32.mrb[39].mxu0 }
 0x140   : > { %2273 = vst.msk [vmem:[%s6162_s15 + $0x20] sm:$0xff] %vm455_vm0, %v2209_v1  ;;  %2470 = vst.msk [vmem:[%s6167_s17 + $0x20] sm:$0xff] %vm455_vm0, %v2406_v52  ;;  %v2142_v48 = vadd.f32 %v1325_v14, %v5839_v10  ;;  %v2339_v36 = vadd.f32 %v1714_v33, %v5839_v10 }
 0x141   : > { %v2212_v32 = vadd.f32 %v6146_v34, %v2143_v25  ;;  %v2409_v50 = vadd.f32 %v6151_v13, %v2340_v60 }
 0x142   : > { %v2211_v0 = vadd.f32 %v6146_v34, %v2142_v48  ;;  %v2408_v4 = vadd.f32 %v6151_v13, %v2339_v36  ;;  %v4475_v44 = vpop.f32.mrb[40].mxu1  ;;  %v4579_v12 = vpop.f32.mrb[40].mxu0 }
 0x143   : > { %2276 = vst.msk [vmem:[%s6162_s15 + $0x38] sm:$0xff] %vm455_vm0, %v2212_v32  ;;  %2473 = vst.msk [vmem:[%s6167_s17 + $0x38] sm:$0xff] %vm455_vm0, %v2409_v50  ;;  %v2145_v16 = vadd.f32 %v4475_v44, %v5855_v19  ;;  %v2342_v10 = vadd.f32 %v4579_v12, %v5855_v19  ;;  %v1335_v51 = vpop.f32.mrb[41].mxu1  ;;  %v1724_v35 = vpop.f32.mrb[41].mxu0 }
 0x144   : > { %2275 = vst.msk [vmem:[%s6162_s15 + $0x30] sm:$0xff] %vm455_vm0, %v2211_v0  ;;  %2472 = vst.msk [vmem:[%s6167_s17 + $0x30] sm:$0xff] %vm455_vm0, %v2408_v4  ;;  %v2144_v18 = vadd.f32 %v1335_v51, %v5863_v29  ;;  %v2341_v28 = vadd.f32 %v1724_v35, %v5863_v29 }
 0x145   : > { %v2214_v1 = vadd.f32 %v6146_v34, %v2145_v16  ;;  %v2411_v52 = vadd.f32 %v6151_v13, %v2342_v10 }
 0x146   : > { %v2213_v15 = vadd.f32 %v6146_v34, %v2144_v18  ;;  %v2410_v19 = vadd.f32 %v6151_v13, %v2341_v28  ;;  %v4478_v49 = vpop.f32.mrb[42].mxu1  ;;  %v4582_v25 = vpop.f32.mrb[42].mxu0 }
 0x147   : > { %2278 = vst.msk [vmem:[%s6162_s15 + $0x48] sm:$0xff] %vm455_vm0, %v2214_v1  ;;  %2475 = vst.msk [vmem:[%s6167_s17 + $0x48] sm:$0xff] %vm455_vm0, %v2411_v52  ;;  %v2147_v60 = vadd.f32 %v4478_v49, %v5879_v37  ;;  %v2344_v29 = vadd.f32 %v4582_v25, %v5879_v37  ;;  %v1345_v14 = vpop.f32.mrb[43].mxu1  ;;  %v1734_v33 = vpop.f32.mrb[43].mxu0 }
 0x148   : > { %2277 = vst.msk [vmem:[%s6162_s15 + $0x40] sm:$0xff] %vm455_vm0, %v2213_v15  ;;  %2474 = vst.msk [vmem:[%s6167_s17 + $0x40] sm:$0xff] %vm455_vm0, %v2410_v19  ;;  %v2146_v48 = vadd.f32 %v1345_v14, %v5887_v45  ;;  %v2343_v36 = vadd.f32 %v1734_v33, %v5887_v45 }
 0x149   : > { %v2216_v32 = vadd.f32 %v6146_v34, %v2147_v60  ;;  %v2413_v50 = vadd.f32 %v6151_v13, %v2344_v29 }
 0x14a   : > { %v2215_v0 = vadd.f32 %v6146_v34, %v2146_v48  ;;  %v2412_v37 = vadd.f32 %v6151_v13, %v2343_v36  ;;  %v4481_v4 = vpop.f32.mrb[44].mxu1  ;;  %v4585_v44 = vpop.f32.mrb[44].mxu0 }
 0x14b   : > { %2280 = vst.msk [vmem:[%s6162_s15 + $0x58] sm:$0xff] %vm455_vm0, %v2216_v32  ;;  %2477 = vst.msk [vmem:[%s6167_s17 + $0x58] sm:$0xff] %vm455_vm0, %v2413_v50  ;;  %v2149_v12 = vadd.f32 %v4481_v4, %v5903_v53  ;;  %v2346_v45 = vadd.f32 %v4585_v44, %v5903_v53  ;;  %v1355_v16 = vpop.f32.mrb[45].mxu1  ;;  %v1744_v10 = vpop.f32.mrb[45].mxu0 }
 0x14c   : > { %2279 = vst.msk [vmem:[%s6162_s15 + $0x50] sm:$0xff] %vm455_vm0, %v2215_v0  ;;  %2476 = vst.msk [vmem:[%s6167_s17 + $0x50] sm:$0xff] %vm455_vm0, %v2412_v37  ;;  %v2148_v51 = vadd.f32 %v1355_v16, %v5911_v61  ;;  %v2345_v35 = vadd.f32 %v1744_v10, %v5911_v61 }
 0x14d   : > { %v2218_v18 = vadd.f32 %v6146_v34, %v2149_v12  ;;  %v2415_v28 = vadd.f32 %v6151_v13, %v2346_v45 }
 0x14e   : > { %v2217_v1 = vadd.f32 %v6146_v34, %v2148_v51  ;;  %v2414_v53 = vadd.f32 %v6151_v13, %v2345_v35  ;;  %v4484_v52 = vpop.f32.mrb[46].mxu1  ;;  %v4588_v15 = vpop.f32.mrb[46].mxu0 }
 0x14f   : > { %2282 = vst.msk [vmem:[%s6162_s15 + $0x68] sm:$0xff] %vm455_vm0, %v2218_v18  ;;  %2479 = vst.msk [vmem:[%s6167_s17 + $0x68] sm:$0xff] %vm455_vm0, %v2415_v28  ;;  %v2151_v19 = vadd.f32 %v4484_v52, %v5927_v3  ;;  %v2348_v61 = vadd.f32 %v4588_v15, %v5927_v3  ;;  %v1365_v49 = vpop.f32.mrb[47].mxu1  ;;  %v1754_v25 = vpop.f32.mrb[47].mxu0 }
 0x150   : > { %2281 = vst.msk [vmem:[%s6162_s15 + $0x60] sm:$0xff] %vm455_vm0, %v2217_v1  ;;  %2478 = vst.msk [vmem:[%s6167_s17 + $0x60] sm:$0xff] %vm455_vm0, %v2414_v53  ;;  %v2150_v60 = vadd.f32 %v1365_v49, %v5935_v22  ;;  %v2347_v29 = vadd.f32 %v1754_v25, %v5935_v22 }
 0x151   : > { %v2220_v14 = vadd.f32 %v6146_v34, %v2151_v19  ;;  %v2417_v33 = vadd.f32 %v6151_v13, %v2348_v61 }
 0x152   : > { %v2219_v48 = vadd.f32 %v6146_v34, %v2150_v60  ;;  %v2416_v3 = vadd.f32 %v6151_v13, %v2347_v29  ;;  %v4487_v36 = vpop.f32.mrb[48].mxu1  ;;  %v4591_v32 = vpop.f32.mrb[48].mxu0 }
 0x153   : > { %2284 = vst.msk [vmem:[%s6162_s15 + $0x78] sm:$0xff] %vm455_vm0, %v2220_v14  ;;  %2481 = vst.msk [vmem:[%s6167_s17 + $0x78] sm:$0xff] %vm455_vm0, %v2417_v33  ;;  %v2153_v50 = vadd.f32 %v4487_v36, %v5951_v26  ;;  %v2350_v22 = vadd.f32 %v4591_v32, %v5951_v26  ;;  %v1375_v0 = vpop.f32.mrb[49].mxu1  ;;  %v1764_v37 = vpop.f32.mrb[49].mxu0 }
 0x154   : > { %2283 = vst.msk [vmem:[%s6162_s15 + $0x70] sm:$0xff] %vm455_vm0, %v2219_v48  ;;  %2480 = vst.msk [vmem:[%s6167_s17 + $0x70] sm:$0xff] %vm455_vm0, %v2416_v3  ;;  %v2152_v4 = vadd.f32 %v1375_v0, %v5959_v42  ;;  %v2349_v44 = vadd.f32 %v1764_v37, %v5959_v42 }
 0x155   : > { %v2222_v12 = vadd.f32 %v6146_v34, %v2153_v50  ;;  %v2419_v45 = vadd.f32 %v6151_v13, %v2350_v22 }
 0x156   : > { %v2221_v16 = vadd.f32 %v6146_v34, %v2152_v4  ;;  %v2418_v26 = vadd.f32 %v6151_v13, %v2349_v44  ;;  %v4490_v10 = vpop.f32.mrb[50].mxu1  ;;  %v4594_v51 = vpop.f32.mrb[50].mxu0 }
 0x157   : > { %2286 = vst.msk [vmem:[%s6162_s15 + $0x88] sm:$0xff] %vm455_vm0, %v2222_v12  ;;  %2483 = vst.msk [vmem:[%s6167_s17 + $0x88] sm:$0xff] %vm455_vm0, %v2419_v45  ;;  %v2155_v35 = vadd.f32 %v4490_v10, %v5975_v58  ;;  %v2352_v42 = vadd.f32 %v4594_v51, %v5975_v58  ;;  %v1385_v18 = vpop.f32.mrb[51].mxu1  ;;  %v1774_v28 = vpop.f32.mrb[51].mxu0 }
 0x158   : > { %2285 = vst.msk [vmem:[%s6162_s15 + $0x80] sm:$0xff] %vm455_vm0, %v2221_v16  ;;  %2482 = vst.msk [vmem:[%s6167_s17 + $0x80] sm:$0xff] %vm455_vm0, %v2418_v26  ;;  %v2154_v1 = vadd.f32 %v1385_v18, %v5983_v9  ;;  %v2351_v53 = vadd.f32 %v1774_v28, %v5983_v9 }
 0x159   : > { %v2224_v52 = vadd.f32 %v6146_v34, %v2155_v35  ;;  %v2421_v15 = vadd.f32 %v6151_v13, %v2352_v42 }
 0x15a   : > { %v2223_v19 = vadd.f32 %v6146_v34, %v2154_v1  ;;  %v2420_v58 = vadd.f32 %v6151_v13, %v2351_v53  ;;  %v4493_v61 = vpop.f32.mrb[52].mxu1  ;;  %v4597_v49 = vpop.f32.mrb[52].mxu0 }
 0x15b   : > { %2288 = vst.msk [vmem:[%s6162_s15 + $0x98] sm:$0xff] %vm455_vm0, %v2224_v52  ;;  %2485 = vst.msk [vmem:[%s6167_s17 + $0x98] sm:$0xff] %vm455_vm0, %v2421_v15  ;;  %v2157_v25 = vadd.f32 %v4493_v61, %v5999_v27  ;;  %v2354_v9 = vadd.f32 %v4597_v49, %v5999_v27  ;;  %v1395_v60 = vpop.f32.mrb[53].mxu1  ;;  %v1784_v29 = vpop.f32.mrb[53].mxu0 }
 0x15c   : > { %2287 = vst.msk [vmem:[%s6162_s15 + $0x90] sm:$0xff] %vm455_vm0, %v2223_v19  ;;  %2484 = vst.msk [vmem:[%s6167_s17 + $0x90] sm:$0xff] %vm455_vm0, %v2420_v58  ;;  %v2156_v14 = vadd.f32 %v1395_v60, %v6007_v43  ;;  %v2353_v33 = vadd.f32 %v1784_v29, %v6007_v43 }
 0x15d   : > { %v2226_v48 = vadd.f32 %v6146_v34, %v2157_v25  ;;  %v2423_v3 = vadd.f32 %v6151_v13, %v2354_v9 }
 0x15e   : > { %v2225_v36 = vadd.f32 %v6146_v34, %v2156_v14  ;;  %v2422_v27 = vadd.f32 %v6151_v13, %v2353_v33  ;;  %v4496_v32 = vpop.f32.mrb[54].mxu1  ;;  %v4600_v50 = vpop.f32.mrb[54].mxu0 }
 0x15f   : > { %2290 = vst.msk [vmem:[%s6162_s15 + $0xa8] sm:$0xff] %vm455_vm0, %v2226_v48  ;;  %2487 = vst.msk [vmem:[%s6167_s17 + $0xa8] sm:$0xff] %vm455_vm0, %v2423_v3  ;;  %v2159_v22 = vadd.f32 %v4496_v32, %v6023_v59  ;;  %v2356_v43 = vadd.f32 %v4600_v50, %v6023_v59  ;;  %v1405_v0 = vpop.f32.mrb[55].mxu1  ;;  %v1794_v37 = vpop.f32.mrb[55].mxu0 }
 0x160   : > { %2289 = vst.msk [vmem:[%s6162_s15 + $0xa0] sm:$0xff] %vm455_vm0, %v2225_v36  ;;  %2486 = vst.msk [vmem:[%s6167_s17 + $0xa0] sm:$0xff] %vm455_vm0, %v2422_v27  ;;  %v2158_v4 = vadd.f32 %v1405_v0, %v6031_v7  ;;  %v2355_v44 = vadd.f32 %v1794_v37, %v6031_v7 }
 0x161   : > { %v2228_v12 = vadd.f32 %v6146_v34, %v2159_v22  ;;  %v2425_v45 = vadd.f32 %v6151_v13, %v2356_v43 }
 0x162   : > { %v2227_v16 = vadd.f32 %v6146_v34, %v2158_v4  ;;  %v2424_v59 = vadd.f32 %v6151_v13, %v2355_v44  ;;  %v4499_v26 = vpop.f32.mrb[56].mxu1  ;;  %v4603_v10 = vpop.f32.mrb[56].mxu0 }
 0x163   : > { %2292 = vst.msk [vmem:[%s6162_s15 + $0xb8] sm:$0xff] %vm455_vm0, %v2228_v12  ;;  %2489 = vst.msk [vmem:[%s6167_s17 + $0xb8] sm:$0xff] %vm455_vm0, %v2425_v45  ;;  %v2161_v51 = vadd.f32 %v4499_v26, %v6047_v40  ;;  %v2358_v7 = vadd.f32 %v4603_v10, %v6047_v40  ;;  %v1415_v35 = vpop.f32.mrb[57].mxu1  ;;  %v1804_v42 = vpop.f32.mrb[57].mxu0 }
 0x164   : > { %2291 = vst.msk [vmem:[%s6162_s15 + $0xb0] sm:$0xff] %vm455_vm0, %v2227_v16  ;;  %2488 = vst.msk [vmem:[%s6167_s17 + $0xb0] sm:$0xff] %vm455_vm0, %v2424_v59  ;;  %v2160_v18 = vadd.f32 %v1415_v35, %v6055_v8  ;;  %v2357_v28 = vadd.f32 %v1804_v42, %v6055_v8 }
 0x165   : > { %v2230_v1 = vadd.f32 %v6146_v34, %v2161_v51  ;;  %v2427_v53 = vadd.f32 %v6151_v13, %v2358_v7 }
 0x166   : > { %v2229_v52 = vadd.f32 %v6146_v34, %v2160_v18  ;;  %v2426_v40 = vadd.f32 %v6151_v13, %v2357_v28  ;;  %v4502_v15 = vpop.f32.mrb[58].mxu1  ;;  %v4606_v19 = vpop.f32.mrb[58].mxu0 }
 0x167   : > { %2294 = vst.msk [vmem:[%s6162_s15 + $0xc8] sm:$0xff] %vm455_vm0, %v2230_v1  ;;  %2491 = vst.msk [vmem:[%s6167_s17 + $0xc8] sm:$0xff] %vm455_vm0, %v2427_v53  ;;  %v2163_v58 = vadd.f32 %v4502_v15, %v6071_v41  ;;  %v2360_v8 = vadd.f32 %v4606_v19, %v6071_v41  ;;  %v1425_v61 = vpop.f32.mrb[59].mxu1  ;;  %v1814_v49 = vpop.f32.mrb[59].mxu0 }
 0x168   : > { %2293 = vst.msk [vmem:[%s6162_s15 + $0xc0] sm:$0xff] %vm455_vm0, %v2229_v52  ;;  %2490 = vst.msk [vmem:[%s6167_s17 + $0xc0] sm:$0xff] %vm455_vm0, %v2426_v40  ;;  %v2162_v25 = vadd.f32 %v1425_v61, %v6079_v5  ;;  %v2359_v9 = vadd.f32 %v1814_v49, %v6079_v5 }
 0x169   : > { %v2232_v60 = vadd.f32 %v6146_v34, %v2163_v58  ;;  %v2429_v29 = vadd.f32 %v6151_v13, %v2360_v8 }
 0x16a   : > { %v2231_v14 = vadd.f32 %v6146_v34, %v2162_v25  ;;  %v2428_v41 = vadd.f32 %v6151_v13, %v2359_v9  ;;  %v4505_v33 = vpop.f32.mrb[60].mxu1  ;;  %v4609_v48 = vpop.f32.mrb[60].mxu0 }
 0x16b   : > { %2296 = vst.msk [vmem:[%s6162_s15 + $0xd8] sm:$0xff] %vm455_vm0, %v2232_v60  ;;  %2493 = vst.msk [vmem:[%s6167_s17 + $0xd8] sm:$0xff] %vm455_vm0, %v2429_v29  ;;  %v2165_v3 = vadd.f32 %v4505_v33, %v6095_v2  ;;  %v2362_v5 = vadd.f32 %v4609_v48, %v6095_v2  ;;  %v1435_v36 = vpop.f32.mrb[61].mxu1  ;;  %v1824_v27 = vpop.f32.mrb[61].mxu0 }
 0x16c   : > { %2295 = vst.msk [vmem:[%s6162_s15 + $0xd0] sm:$0xff] %vm455_vm0, %v2231_v14  ;;  %2492 = vst.msk [vmem:[%s6167_s17 + $0xd0] sm:$0xff] %vm455_vm0, %v2428_v41  ;;  %v2164_v32 = vadd.f32 %v1435_v36, %v6103_v24  ;;  %v2361_v50 = vadd.f32 %v1824_v27, %v6103_v24 }
 0x16d   : > { %v2234_v22 = vadd.f32 %v6146_v34, %v2165_v3  ;;  %v2431_v43 = vadd.f32 %v6151_v13, %v2362_v5 }
 0x16e   : > { %v2233_v0 = vadd.f32 %v6146_v34, %v2164_v32  ;;  %v2430_v2 = vadd.f32 %v6151_v13, %v2361_v50  ;;  %v4508_v37 = vpop.f32.mrb[62].mxu1  ;;  %v4612_v4 = vpop.f32.mrb[62].mxu0 }
 0x16f   : > { %2298 = vst.msk [vmem:[%s6162_s15 + $0xe8] sm:$0xff] %vm455_vm0, %v2234_v22  ;;  %2495 = vst.msk [vmem:[%s6167_s17 + $0xe8] sm:$0xff] %vm455_vm0, %v2431_v43  ;;  %v2167_v44 = vadd.f32 %v4508_v37, %v6119_v56  ;;  %v2364_v24 = vadd.f32 %v4612_v4, %v6119_v56  ;;  %v1445_v12 = vpop.f32.mrb[63].mxu1  ;;  %v1834_v45 = vpop.f32.mrb[63].mxu0 }
 0x170   : > { %2297 = vst.msk [vmem:[%s6162_s15 + $0xe0] sm:$0xff] %vm455_vm0, %v2233_v0  ;;  %2494 = vst.msk [vmem:[%s6167_s17 + $0xe0] sm:$0xff] %vm455_vm0, %v2430_v2  ;;  %v2166_v16 = vadd.f32 %v1445_v12, %v6127_v57  ;;  %v2363_v59 = vadd.f32 %v1834_v45, %v6127_v57 }
 0x171   : > { %v2236_v26 = vadd.f32 %v6146_v34, %v2167_v44  ;;  %v2433_v10 = vadd.f32 %v6151_v13, %v2364_v24 }
 0x172   : > { %v2235_v51 = vadd.f32 %v6146_v34, %v2166_v16  ;;  %v2432_v56 = vadd.f32 %v6151_v13, %v2363_v59  ;;  %v4511_v7 = vpop.f32.mrb[64].mxu1  ;;  %v4615_v35 = vpop.f32.mrb[64].mxu0 }
 0x173   : > { %2300 = vst.msk [vmem:[%s6162_s15 + $0xf8] sm:$0xff] %vm455_vm0, %v2236_v26  ;;  %2497 = vst.msk [vmem:[%s6167_s17 + $0xf8] sm:$0xff] %vm455_vm0, %v2433_v10  ;;  %v2169_v42 = vadd.f32 %v4511_v7, %v5758_v20  ;;  %v2366_v57 = vadd.f32 %v4615_v35, %v5758_v20  ;;  %v1455_v18 = vpop.f32.mrb[65].mxu1  ;;  %v1844_v28 = vpop.f32.mrb[65].mxu0 }
 0x174   : > { %2299 = vst.msk [vmem:[%s6162_s15 + $0xf0] sm:$0xff] %vm455_vm0, %v2235_v51  ;;  %2496 = vst.msk [vmem:[%s6167_s17 + $0xf0] sm:$0xff] %vm455_vm0, %v2432_v56  ;;  %v2168_v1 = vadd.f32 %v1455_v18, %v5766_v30  ;;  %v2365_v53 = vadd.f32 %v1844_v28, %v5766_v30 }
 0x175   : > { %v2238_v52 = vadd.f32 %v6146_v34, %v2169_v42  ;;  %v2435_v40 = vadd.f32 %v6151_v13, %v2366_v57 }
 0x176   : > { %v2237_v15 = vadd.f32 %v6146_v34, %v2168_v1  ;;  %v2434_v20 = vadd.f32 %v6151_v13, %v2365_v53  ;;  %v4514_v19 = vpop.f32.mrb[66].mxu1  ;;  %v4618_v58 = vpop.f32.mrb[66].mxu0 }
 0x177   : > { %2302 = vst.msk [vmem:[%s6162_s15 + $0x108] sm:$0xff] %vm455_vm0, %v2238_v52  ;;  %2499 = vst.msk [vmem:[%s6167_s17 + $0x108] sm:$0xff] %vm455_vm0, %v2435_v40  ;;  %v2171_v8 = vadd.f32 %v4514_v19, %v5785_v38  ;;  %v2368_v30 = vadd.f32 %v4618_v58, %v5785_v38  ;;  %v1465_v61 = vpop.f32.mrb[67].mxu1  ;;  %v1854_v49 = vpop.f32.mrb[67].mxu0 }
 0x178   : > { %2301 = vst.msk [vmem:[%s6162_s15 + $0x100] sm:$0xff] %vm455_vm0, %v2237_v15  ;;  %2498 = vst.msk [vmem:[%s6167_s17 + $0x100] sm:$0xff] %vm455_vm0, %v2434_v20  ;;  %v2170_v25 = vadd.f32 %v1465_v61, %v5793_v46  ;;  %v2367_v9 = vadd.f32 %v1854_v49, %v5793_v46 }
 0x179   : > { %v2240_v60 = vadd.f32 %v6146_v34, %v2171_v8  ;;  %v2437_v29 = vadd.f32 %v6151_v13, %v2368_v30 }
 0x17a   : > { %v2239_v14 = vadd.f32 %v6146_v34, %v2170_v25  ;;  %v2436_v38 = vadd.f32 %v6151_v13, %v2367_v9  ;;  %v4517_v41 = vpop.f32.mrb[68].mxu1  ;;  %v4621_v33 = vpop.f32.mrb[68].mxu0 }
 0x17b   : > { %2304 = vst.msk [vmem:[%s6162_s15 + $0x118] sm:$0xff] %vm455_vm0, %v2240_v60  ;;  %2501 = vst.msk [vmem:[%s6167_s17 + $0x118] sm:$0xff] %vm455_vm0, %v2437_v29  ;;  %v2173_v48 = vadd.f32 %v4517_v41, %v5809_v54  ;;  %v2370_v46 = vadd.f32 %v4621_v33, %v5809_v54  ;;  %v1475_v3 = vpop.f32.mrb[69].mxu1  ;;  %v1864_v5 = vpop.f32.mrb[69].mxu0 }
 0x17c   : > { %2303 = vst.msk [vmem:[%s6162_s15 + $0x110] sm:$0xff] %vm455_vm0, %v2239_v14  ;;  %2500 = vst.msk [vmem:[%s6167_s17 + $0x110] sm:$0xff] %vm455_vm0, %v2436_v38  ;;  %v2172_v36 = vadd.f32 %v1475_v3, %v5817_v62  ;;  %v2369_v27 = vadd.f32 %v1864_v5, %v5817_v62 }
 0x17d   : > { %v2242_v32 = vadd.f32 %v6146_v34, %v2173_v48  ;;  %v2439_v50 = vadd.f32 %v6151_v13, %v2370_v46 }
 0x17e   : > { %v2241_v22 = vadd.f32 %v6146_v34, %v2172_v36  ;;  %v2438_v54 = vadd.f32 %v6151_v13, %v2369_v27  ;;  %v4520_v43 = vpop.f32.mrb[70].mxu1  ;;  %v4624_v0 = vpop.f32.mrb[70].mxu0 }
 0x17f   : > { %2306 = vst.msk [vmem:[%s6162_s15 + $0x128] sm:$0xff] %vm455_vm0, %v2242_v32  ;;  %2503 = vst.msk [vmem:[%s6167_s17 + $0x128] sm:$0xff] %vm455_vm0, %v2439_v50  ;;  %v2175_v2 = vadd.f32 %v4520_v43, %v5833_v6  ;;  %v2372_v62 = vadd.f32 %v4624_v0, %v5833_v6  ;;  %v1485_v37 = vpop.f32.mrb[71].mxu1  ;;  %v1874_v4 = vpop.f32.mrb[71].mxu0  ;;  %v7340_v0 = vld [vmem:[#allocation5_spill] sm:$0xff] }
 0x180   : > { %2305 = vst.msk [vmem:[%s6162_s15 + $0x120] sm:$0xff] %vm455_vm0, %v2241_v22  ;;  %2502 = vst.msk [vmem:[%s6167_s17 + $0x120] sm:$0xff] %vm455_vm0, %v2438_v54  ;;  %v2174_v44 = vadd.f32 %v1485_v37, %v5841_v11  ;;  %v2371_v24 = vadd.f32 %v1874_v4, %v5841_v11  ;;  %v7341_v4 = vld [vmem:[#allocation6_spill] sm:$0xff] }
 0x181   : > { %v2244_v12 = vadd.f32 %v6146_v34, %v2175_v2  ;;  %v2441_v45 = vadd.f32 %v6151_v13, %v2372_v62 }
 0x182   : > { %v2243_v16 = vadd.f32 %v6146_v34, %v2174_v44  ;;  %v2440_v6 = vadd.f32 %v6151_v13, %v2371_v24  ;;  %v4523_v59 = vpop.f32.mrb[72].mxu1  ;;  %v4627_v26 = vpop.f32.mrb[72].mxu0 }
 0x183   : > { %2308 = vst.msk [vmem:[%s6162_s15 + $0x138] sm:$0xff] %vm455_vm0, %v2244_v12  ;;  %2505 = vst.msk [vmem:[%s6167_s17 + $0x138] sm:$0xff] %vm455_vm0, %v2441_v45  ;;  %v2177_v10 = vadd.f32 %v4523_v59, %v5857_v21  ;;  %v2374_v11 = vadd.f32 %v4627_v26, %v5857_v21  ;;  %v1495_v51 = vpop.f32.mrb[73].mxu1  ;;  %v1884_v56 = vpop.f32.mrb[73].mxu0 }
 0x184   : > { %2307 = vst.msk [vmem:[%s6162_s15 + $0x130] sm:$0xff] %vm455_vm0, %v2243_v16  ;;  %2504 = vst.msk [vmem:[%s6167_s17 + $0x130] sm:$0xff] %vm455_vm0, %v2440_v6  ;;  %v2176_v7 = vadd.f32 %v1495_v51, %v5865_v31  ;;  %v2373_v35 = vadd.f32 %v1884_v56, %v5865_v31 }
 0x185   : > { %v2246_v42 = vadd.f32 %v6146_v34, %v2177_v10  ;;  %v2443_v57 = vadd.f32 %v6151_v13, %v2374_v11  ;;  %v7342_v10 = vld [vmem:[#allocation7_spill] sm:$0xff] }
 0x186   : > { %v2245_v18 = vadd.f32 %v6146_v34, %v2176_v7  ;;  %v2442_v21 = vadd.f32 %v6151_v13, %v2373_v35  ;;  %v4526_v28 = vpop.f32.mrb[74].mxu1  ;;  %v4630_v1 = vpop.f32.mrb[74].mxu0  ;;  %v7343_v35 = vld [vmem:[#allocation8_spill] sm:$0xff] }
 0x187   : > { %2310 = vst.msk [vmem:[%s6162_s15 + $0x148] sm:$0xff] %vm455_vm0, %v2246_v42  ;;  %2507 = vst.msk [vmem:[%s6167_s17 + $0x148] sm:$0xff] %vm455_vm0, %v2443_v57  ;;  %v2179_v53 = vadd.f32 %v4526_v28, %v5881_v39  ;;  %v2376_v31 = vadd.f32 %v4630_v1, %v5881_v39  ;;  %v1505_v52 = vpop.f32.mrb[75].mxu1  ;;  %v1894_v40 = vpop.f32.mrb[75].mxu0 }
 0x188   : > { %2309 = vst.msk [vmem:[%s6162_s15 + $0x140] sm:$0xff] %vm455_vm0, %v2245_v18  ;;  %2506 = vst.msk [vmem:[%s6167_s17 + $0x140] sm:$0xff] %vm455_vm0, %v2442_v21  ;;  %v2178_v15 = vadd.f32 %v1505_v52, %v5889_v47  ;;  %v2375_v20 = vadd.f32 %v1894_v40, %v5889_v47  ;;  %v7344_v52 = vld [vmem:[#allocation9_spill] sm:$0xff] }
 0x189   : > { %v2248_v19 = vadd.f32 %v6146_v34, %v2179_v53  ;;  %v2445_v58 = vadd.f32 %v6151_v13, %v2376_v31 }
 0x18a   : > { %v2247_v8 = vadd.f32 %v6146_v34, %v2178_v15  ;;  %v2444_v39 = vadd.f32 %v6151_v13, %v2375_v20  ;;  %v4529_v30 = vpop.f32.mrb[76].mxu1  ;;  %v4633_v61 = vpop.f32.mrb[76].mxu0 }
 0x18b   : > { %2312 = vst.msk [vmem:[%s6162_s15 + $0x158] sm:$0xff] %vm455_vm0, %v2248_v19  ;;  %2509 = vst.msk [vmem:[%s6167_s17 + $0x158] sm:$0xff] %vm455_vm0, %v2445_v58  ;;  %v2181_v49 = vadd.f32 %v4529_v30, %v5905_v55  ;;  %v2378_v47 = vadd.f32 %v4633_v61, %v5905_v55  ;;  %v1515_v25 = vpop.f32.mrb[77].mxu1  ;;  %v1904_v9 = vpop.f32.mrb[77].mxu0  ;;  %v7345_v58 = vld [vmem:[#allocation10_spill] sm:$0xff] }
 0x18c   : > { %2311 = vst.msk [vmem:[%s6162_s15 + $0x150] sm:$0xff] %vm455_vm0, %v2247_v8  ;;  %2508 = vst.msk [vmem:[%s6167_s17 + $0x150] sm:$0xff] %vm455_vm0, %v2444_v39  ;;  %v2180_v60 = vadd.f32 %v1515_v25, %v5913_v63  ;;  %v2377_v29 = vadd.f32 %v1904_v9, %v5913_v63 }
 0x18d   : > { %v2250_v14 = vadd.f32 %v6146_v34, %v2181_v49  ;;  %v2447_v38 = vadd.f32 %v6151_v13, %v2378_v47 }
 0x18e   : > { %v2249_v41 = vadd.f32 %v6146_v34, %v2180_v60  ;;  %v2446_v55 = vadd.f32 %v6151_v13, %v2377_v29  ;;  %v4532_v33 = vpop.f32.mrb[78].mxu1  ;;  %v4636_v48 = vpop.f32.mrb[78].mxu0  ;;  %v7346_v60 = vld [vmem:[#allocation11_spill] sm:$0xff] }
 0x18f   : > { %2314 = vst.msk [vmem:[%s6162_s15 + $0x168] sm:$0xff] %vm455_vm0, %v2250_v14  ;;  %2511 = vst.msk [vmem:[%s6167_s17 + $0x168] sm:$0xff] %vm455_vm0, %v2447_v38  ;;  %v2183_v46 = vadd.f32 %v4532_v33, %v5929_v17  ;;  %v2380_v63 = vadd.f32 %v4636_v48, %v5929_v17  ;;  %v1525_v3 = vpop.f32.mrb[79].mxu1  ;;  %v1914_v5 = vpop.f32.mrb[79].mxu0 }
 0x190   : > { %2313 = vst.msk [vmem:[%s6162_s15 + $0x160] sm:$0xff] %vm455_vm0, %v2249_v41  ;;  %2510 = vst.msk [vmem:[%s6167_s17 + $0x160] sm:$0xff] %vm455_vm0, %v2446_v55  ;;  %v2182_v36 = vadd.f32 %v1525_v3, %v5937_v23  ;;  %v2379_v27 = vadd.f32 %v1914_v5, %v5937_v23  ;;  %v7347_v55 = vld [vmem:[#allocation12_spill] sm:$0xff] }
 0x191   : > { %v2252_v32 = vadd.f32 %v6146_v34, %v2183_v46  ;;  %v2449_v50 = vadd.f32 %v6151_v13, %v2380_v63 }
 0x192   : > { %v2251_v22 = vadd.f32 %v6146_v34, %v2182_v36  ;;  %v2448_v17 = vadd.f32 %v6151_v13, %v2379_v27  ;;  %v4535_v54 = vpop.f32.mrb[80].mxu1  ;;  %v4639_v43 = vpop.f32.mrb[80].mxu0 }
 0x193   : > { %2316 = vst.msk [vmem:[%s6162_s15 + $0x178] sm:$0xff] %vm455_vm0, %v2252_v32  ;;  %2513 = vst.msk [vmem:[%s6167_s17 + $0x178] sm:$0xff] %vm455_vm0, %v2449_v50  ;;  %v2185_v2 = vadd.f32 %v4535_v54, %v7340_v0  ;;  %v2382_v23 = vadd.f32 %v4639_v43, %v7340_v0  ;;  %v1535_v62 = vpop.f32.mrb[81].mxu1  ;;  %v1924_v37 = vpop.f32.mrb[81].mxu0  ;;  %v7348_v32 = vld [vmem:[#allocation13_spill] sm:$0xff]  ;;  %v7349_v43 = vld [vmem:[#allocation14_spill] sm:$0xff] }
 0x194   : > { %2315 = vst.msk [vmem:[%s6162_s15 + $0x170] sm:$0xff] %vm455_vm0, %v2251_v22  ;;  %2512 = vst.msk [vmem:[%s6167_s17 + $0x170] sm:$0xff] %vm455_vm0, %v2448_v17  ;;  %v2184_v44 = vadd.f32 %v1535_v62, %v7341_v4  ;;  %v2381_v24 = vadd.f32 %v1924_v37, %v7341_v4 }
 0x195   : > { %v2254_v12 = vadd.f32 %v6146_v34, %v2185_v2  ;;  %v2451_v45 = vadd.f32 %v6151_v13, %v2382_v23 }
 0x196   : > { %v2253_v16 = vadd.f32 %v6146_v34, %v2184_v44  ;;  %v2450_v6 = vadd.f32 %v6151_v13, %v2381_v24  ;;  %v4538_v59 = vpop.f32.mrb[82].mxu1  ;;  %v4642_v26 = vpop.f32.mrb[82].mxu0 }
 0x197   : > { %2318 = vst.msk [vmem:[%s6162_s15 + $0x188] sm:$0xff] %vm455_vm0, %v2254_v12  ;;  %2515 = vst.msk [vmem:[%s6167_s17 + $0x188] sm:$0xff] %vm455_vm0, %v2451_v45  ;;  %v2187_v11 = vadd.f32 %v4538_v59, %v7342_v10  ;;  %v2384_v51 = vadd.f32 %v4642_v26, %v7342_v10  ;;  %v1545_v56 = vpop.f32.mrb[83].mxu1  ;;  %v1934_v7 = vpop.f32.mrb[83].mxu0  ;;  %v7350_v12 = vld [vmem:[#allocation15_spill] sm:$0xff]  ;;  %v7351_v26 = vld [vmem:[#allocation16_spill] sm:$0xff] }
 0x198   : > { %2317 = vst.msk [vmem:[%s6162_s15 + $0x180] sm:$0xff] %vm455_vm0, %v2253_v16  ;;  %2514 = vst.msk [vmem:[%s6167_s17 + $0x180] sm:$0xff] %vm455_vm0, %v2450_v6  ;;  %v2186_v42 = vadd.f32 %v1545_v56, %v7343_v35  ;;  %v2383_v57 = vadd.f32 %v1934_v7, %v7343_v35 }
 0x199   : > { %v2256_v18 = vadd.f32 %v6146_v34, %v2187_v11  ;;  %v2453_v21 = vadd.f32 %v6151_v13, %v2384_v51 }
 0x19a   : > { %v2255_v28 = vadd.f32 %v6146_v34, %v2186_v42  ;;  %v2452_v1 = vadd.f32 %v6151_v13, %v2383_v57  ;;  %v4541_v53 = vpop.f32.mrb[84].mxu1  ;;  %v4645_v31 = vpop.f32.mrb[84].mxu0 }
 0x19b   : > { %2320 = vst.msk [vmem:[%s6162_s15 + $0x198] sm:$0xff] %vm455_vm0, %v2256_v18  ;;  %2517 = vst.msk [vmem:[%s6167_s17 + $0x198] sm:$0xff] %vm455_vm0, %v2453_v21  ;;  %v2189_v40 = vadd.f32 %v4541_v53, %v7344_v52  ;;  %v2386_v15 = vadd.f32 %v4645_v31, %v7344_v52  ;;  %v1555_v20 = vpop.f32.mrb[85].mxu1  ;;  %v1944_v19 = vpop.f32.mrb[85].mxu0  ;;  %v7352_v18 = vld [vmem:[#allocation17_spill] sm:$0xff]  ;;  %v7353_v31 = vld [vmem:[#allocation18_spill] sm:$0xff] }
 0x19c   : > { %2319 = vst.msk [vmem:[%s6162_s15 + $0x190] sm:$0xff] %vm455_vm0, %v2255_v28  ;;  %2516 = vst.msk [vmem:[%s6167_s17 + $0x190] sm:$0xff] %vm455_vm0, %v2452_v1  ;;  %v2188_v8 = vadd.f32 %v1555_v20, %v7345_v58  ;;  %v2385_v39 = vadd.f32 %v1944_v19, %v7345_v58 }
 0x19d   : > { %v2258_v30 = vadd.f32 %v6146_v34, %v2189_v40  ;;  %v2455_v61 = vadd.f32 %v6151_v13, %v2386_v15 }
 0x19e   : > { %v2257_v49 = vadd.f32 %v6146_v34, %v2188_v8  ;;  %v2454_v47 = vadd.f32 %v6151_v13, %v2385_v39  ;;  %v4544_v25 = vpop.f32.mrb[86].mxu1  ;;  %v4648_v9 = vpop.f32.mrb[86].mxu0 }
 0x19f   : > { %2322 = vst.msk [vmem:[%s6162_s15 + $0x1a8] sm:$0xff] %vm455_vm0, %v2258_v30  ;;  %2519 = vst.msk [vmem:[%s6167_s17 + $0x1a8] sm:$0xff] %vm455_vm0, %v2455_v61  ;;  %v2191_v29 = vadd.f32 %v4544_v25, %v7346_v60  ;;  %v2388_v14 = vadd.f32 %v4648_v9, %v7346_v60  ;;  %v1565_v38 = vpop.f32.mrb[87].mxu1  ;;  %v1954_v41 = vpop.f32.mrb[87].mxu0  ;;  %v7354_v30 = vld [vmem:[#allocation19_spill] sm:$0xff]  ;;  %v7355_v9 = vld [vmem:[#allocation20_spill] sm:$0xff] }
 0x1a0   : > { %2321 = vst.msk [vmem:[%s6162_s15 + $0x1a0] sm:$0xff] %vm455_vm0, %v2257_v49  ;;  %2518 = vst.msk [vmem:[%s6167_s17 + $0x1a0] sm:$0xff] %vm455_vm0, %v2454_v47  ;;  %v2190_v33 = vadd.f32 %v1565_v38, %v7347_v55  ;;  %v2387_v48 = vadd.f32 %v1954_v41, %v7347_v55 }
 0x1a1   : > { %v2260_v46 = vadd.f32 %v6146_v34, %v2191_v29  ;;  %v2457_v63 = vadd.f32 %v6151_v13, %v2388_v14 }
 0x1a2   : > { %v2259_v3 = vadd.f32 %v6146_v34, %v2190_v33  ;;  %v2456_v5 = vadd.f32 %v6151_v13, %v2387_v48  ;;  %v4547_v36 = vpop.f32.mrb[88].mxu1  ;;  %v4651_v27 = vpop.f32.mrb[88].mxu0 }
 0x1a3   : > { %2324 = vst.msk [vmem:[%s6162_s15 + $0x1b8] sm:$0xff] %vm455_vm0, %v2260_v46  ;;  %2521 = vst.msk [vmem:[%s6167_s17 + $0x1b8] sm:$0xff] %vm455_vm0, %v2457_v63  ;;  %v2193_v50 = vadd.f32 %v4547_v36, %v7348_v32  ;;  %v2390_v22 = vadd.f32 %v4651_v27, %v7348_v32  ;;  %v1575_v17 = vpop.f32.mrb[89].mxu1  ;;  %v1964_v54 = vpop.f32.mrb[89].mxu0 }
 0x1a4   : > { %2323 = vst.msk [vmem:[%s6162_s15 + $0x1b0] sm:$0xff] %vm455_vm0, %v2259_v3  ;;  %2520 = vst.msk [vmem:[%s6167_s17 + $0x1b0] sm:$0xff] %vm455_vm0, %v2456_v5  ;;  %v2192_v0 = vadd.f32 %v1575_v17, %v7349_v43  ;;  %v2389_v2 = vadd.f32 %v1964_v54, %v7349_v43 }
 0x1a5   : > { %v2262_v23 = vadd.f32 %v6146_v34, %v2193_v50  ;;  %v2459_v62 = vadd.f32 %v6151_v13, %v2390_v22 }
 0x1a6   : > { %v2261_v37 = vadd.f32 %v6146_v34, %v2192_v0  ;;  %v2458_v4 = vadd.f32 %v6151_v13, %v2389_v2  ;;  %v4550_v44 = vpop.f32.mrb[90].mxu1  ;;  %v4654_v24 = vpop.f32.mrb[90].mxu0 }
 0x1a7   : > { %2326 = vst.msk [vmem:[%s6162_s15 + $0x1c8] sm:$0xff] %vm455_vm0, %v2262_v23  ;;  %2523 = vst.msk [vmem:[%s6167_s17 + $0x1c8] sm:$0xff] %vm455_vm0, %v2459_v62  ;;  %v2195_v45 = vadd.f32 %v4550_v44, %v7350_v12  ;;  %v2392_v16 = vadd.f32 %v4654_v24, %v7350_v12  ;;  %v1585_v6 = vpop.f32.mrb[91].mxu1  ;;  %v1974_v59 = vpop.f32.mrb[91].mxu0 }
 0x1a8   : > { %2325 = vst.msk [vmem:[%s6162_s15 + $0x1c0] sm:$0xff] %vm455_vm0, %v2261_v37  ;;  %2522 = vst.msk [vmem:[%s6167_s17 + $0x1c0] sm:$0xff] %vm455_vm0, %v2458_v4  ;;  %v2194_v10 = vadd.f32 %v1585_v6, %v7351_v26  ;;  %v2391_v11 = vadd.f32 %v1974_v59, %v7351_v26 }
 0x1a9   : > { %v2264_v51 = vadd.f32 %v6146_v34, %v2195_v45  ;;  %v2461_v56 = vadd.f32 %v6151_v13, %v2392_v16 }
 0x1aa   : > { %v2263_v7 = vadd.f32 %v6146_v34, %v2194_v10  ;;  %v2460_v35 = vadd.f32 %v6151_v13, %v2391_v11  ;;  %v4553_v42 = vpop.f32.mrb[92].mxu1  ;;  %v4657_v57 = vpop.f32.mrb[92].mxu0 }
 0x1ab   : > { %2328 = vst.msk [vmem:[%s6162_s15 + $0x1d8] sm:$0xff] %vm455_vm0, %v2264_v51  ;;  %2525 = vst.msk [vmem:[%s6167_s17 + $0x1d8] sm:$0xff] %vm455_vm0, %v2461_v56  ;;  %v2197_v21 = vadd.f32 %v4553_v42, %v7352_v18  ;;  %v2394_v28 = vadd.f32 %v4657_v57, %v7352_v18  ;;  %v1595_v1 = vpop.f32.mrb[93].mxu1  ;;  %v1984_v53 = vpop.f32.mrb[93].mxu0 }
 0x1ac   : > { %2327 = vst.msk [vmem:[%s6162_s15 + $0x1d0] sm:$0xff] %vm455_vm0, %v2263_v7  ;;  %2524 = vst.msk [vmem:[%s6167_s17 + $0x1d0] sm:$0xff] %vm455_vm0, %v2460_v35  ;;  %v2196_v52 = vadd.f32 %v1595_v1, %v7353_v31  ;;  %v2393_v40 = vadd.f32 %v1984_v53, %v7353_v31 }
 0x1ad   : > { %v2266_v15 = vadd.f32 %v6146_v34, %v2197_v21  ;;  %v2463_v20 = vadd.f32 %v6151_v13, %v2394_v28 }
 0x1ae   : > { %v2265_v19 = vadd.f32 %v6146_v34, %v2196_v52  ;;  %v2462_v58 = vadd.f32 %v6151_v13, %v2393_v40  ;;  %v4556_v8 = vpop.f32.mrb[94].mxu1  ;;  %v4660_v39 = vpop.f32.mrb[94].mxu0  ;;  %2544 = sbr.rel (!%p5186_p4) target bundleno = 509 (0x1fd), region = 44 }
 0x1af   : > { %2330 = vst.msk [vmem:[%s6162_s15 + $0x1e8] sm:$0xff] %vm455_vm0, %v2266_v15  ;;  %2527 = vst.msk [vmem:[%s6167_s17 + $0x1e8] sm:$0xff] %vm455_vm0, %v2463_v20  ;;  %v2199_v61 = vadd.f32 %v4556_v8, %v7354_v30  ;;  %v2396_v49 = vadd.f32 %v4660_v39, %v7354_v30  ;;  %v1605_v47 = vpop.f32.mrb[95].mxu1  ;;  %v1994_v25 = vpop.f32.mrb[95].mxu0 }
 0x1b0   : > { %2329 = vst.msk [vmem:[%s6162_s15 + $0x1e0] sm:$0xff] %vm455_vm0, %v2265_v19  ;;  %2526 = vst.msk [vmem:[%s6167_s17 + $0x1e0] sm:$0xff] %vm455_vm0, %v2462_v58  ;;  %v2198_v60 = vadd.f32 %v1605_v47, %v7355_v9  ;;  %v2395_v29 = vadd.f32 %v1994_v25, %v7355_v9 }
 0x1b1   : > { %v2268_v14 = vadd.f32 %v6146_v34, %v2199_v61  ;;  %v2465_v38 = vadd.f32 %v6151_v13, %v2396_v49 }
 0x1b2   : > { %v2267_v41 = vadd.f32 %v6146_v34, %v2198_v60  ;;  %v2464_v55 = vadd.f32 %v6151_v13, %v2395_v29 }
 0x1b3   : > { %2332 = vst.msk [vmem:[%s6162_s15 + $0x1f8] sm:$0xff] %vm455_vm0, %v2268_v14  ;;  %2529 = vst.msk [vmem:[%s6167_s17 + $0x1f8] sm:$0xff] %vm455_vm0, %v2465_v38 }
 0x1b4   : > { %2331 = vst.msk [vmem:[%s6162_s15 + $0x1f0] sm:$0xff] %vm455_vm0, %v2267_v41  ;;  %2528 = vst.msk [vmem:[%s6167_s17 + $0x1f0] sm:$0xff] %vm455_vm0, %v2464_v55 }
 0x1b5   : > { %s7375_s18 = smov (!%p2547_p8, %s2546_s18), 64 }
 0x1b6   : > { %s4093_s23 = sshll.u32 %s7375_s18, 7 }
 0x1b7   : > { %p4096_p9 = scmp.eq.s32.totalorder %s4093_s23, 0 }
 0x1b8   : > { %s6684_s26 = sshrl.u32 (!%p4096_p9), %s7375_s18, 6 }
 0x1b9   : > { %2555 = sbr.rel (%p4096_p9) target bundleno = 509 (0x1fd), region = 48  ;;  %p4097_p10 = scmp.le.s32.totalorder (!%p4096_p9), %s6684_s26, 0 }
 0x1c0   : > { %3767 = sbr.rel (%p4097_p10) target bundleno = 488 (0x1e8), region = 268  ;;  %s7356_s29 = smov (!%p4097_p10), %s6678_s22 }
 0x1c1   : > { %s7357_s30 = smov (!%p4097_p10), %s5773_s24  ;;  %s6693_s10 = smov (!%p4097_p10), 0  }
 0x1c2   : > { %s6695_s11 = smov (!%p4097_p10), 0  }
 0x1c7 LB: >> { %v2743_v34 = vld [vmem:[%s5031_s30] sm:$0xff]  ;;  %v2745_v13 = vld [vmem:[%s5031_s30 + $0x8] sm:$0xff]  ;;  %v2747_v33 = vld [vmem:[%s5031_s30 + $0x10] sm:$0xff]  ;;  %s2871_s12 = sadd.s32 1, %s5035_s10  ;;  %s2737_s11 = sadd.s32 1, %s5039_s11   ;;  %s5039_s11 = sphi %s6695_s11, %s2737_s11   ;;  %s5035_s10 = sphi %s6693_s10, %s7360_s10   ;;  %s5031_s30 = sphi %s7357_s30, %s7359_s30   ;;  %s5027_s29 = sphi %s7356_s29, %s7358_s29  }
 0x1c8   : >> { %2744 = vst [vmem:[%s5027_s29] sm:$0xff] %v2743_v34  ;;  %2746 = vst [vmem:[%s5027_s29 + $0x8] sm:$0xff] %v2745_v13  ;;  %v2749_v48 = vld [vmem:[%s5031_s30 + $0x18] sm:$0xff]  ;;  %v2751_v46 = vld [vmem:[%s5031_s30 + $0x20] sm:$0xff]  ;;  %p2872_p11 = scmp.ge.s32.totalorder %s2871_s12, %s6684_s26  ;;  %p2736_p12 = scmp.ge.s32.totalorder %s2737_s11, %s6684_s26 }
 0x1c9   : >> { %2748 = vst [vmem:[%s5027_s29 + $0x10] sm:$0xff] %v2747_v33  ;;  %v2753_v63 = vld [vmem:[%s5031_s30 + $0x28] sm:$0xff]  ;;  %2750 = vst [vmem:[%s5027_s29 + $0x18] sm:$0xff] %v2749_v48  ;;  %v2755_v3 = vld [vmem:[%s5031_s30 + $0x30] sm:$0xff] }
 0x1ca   : >> { %2752 = vst [vmem:[%s5027_s29 + $0x20] sm:$0xff] %v2751_v46  ;;  %2754 = vst [vmem:[%s5027_s29 + $0x28] sm:$0xff] %v2753_v63  ;;  %v2757_v5 = vld [vmem:[%s5031_s30 + $0x38] sm:$0xff]  ;;  %v2759_v36 = vld [vmem:[%s5031_s30 + $0x40] sm:$0xff]  ;;  %s7377_s12 = smov (%p2872_p11, %s2871_s12), 0 }
 0x1cb   : >> { %2756 = vst [vmem:[%s5027_s29 + $0x30] sm:$0xff] %v2755_v3  ;;  %2758 = vst [vmem:[%s5027_s29 + $0x38] sm:$0xff] %v2757_v5  ;;  %v2761_v27 = vld [vmem:[%s5031_s30 + $0x48] sm:$0xff]  ;;  %v2763_v32 = vld [vmem:[%s5031_s30 + $0x50] sm:$0xff]  ;;  %s4098_s13 = sshll.u32 %s7377_s12, 9  ;;  %s7360_s10 = smov %s7377_s12 }
 0x1cc   : >> { %2760 = vst [vmem:[%s5027_s29 + $0x40] sm:$0xff] %v2759_v36  ;;  %v2765_v50 = vld [vmem:[%s5031_s30 + $0x58] sm:$0xff]  ;;  %2762 = vst [vmem:[%s5027_s29 + $0x48] sm:$0xff] %v2761_v27  ;;  %v2767_v22 = vld [vmem:[%s5031_s30 + $0x60] sm:$0xff]  ;;  %s6751_s14 = scalar_lea.vmem %s5773_s24, %s4098_s13 [#allocation2]   ;;  %s6754_s19 = scalar_lea.vmem %s6678_s22, %s4098_s13  }
 0x1cd   : >> { %2764 = vst [vmem:[%s5027_s29 + $0x50] sm:$0xff] %v2763_v32  ;;  %2766 = vst [vmem:[%s5027_s29 + $0x58] sm:$0xff] %v2765_v50  ;;  %v2769_v17 = vld [vmem:[%s5031_s30 + $0x68] sm:$0xff]  ;;  %v2771_v54 = vld [vmem:[%s5031_s30 + $0x70] sm:$0xff] }
 0x1ce   : >> { %2768 = vst [vmem:[%s5027_s29 + $0x60] sm:$0xff] %v2767_v22  ;;  %2770 = vst [vmem:[%s5027_s29 + $0x68] sm:$0xff] %v2769_v17  ;;  %v2773_v43 = vld [vmem:[%s5031_s30 + $0x78] sm:$0xff]  ;;  %v2775_v0 = vld [vmem:[%s5031_s30 + $0x80] sm:$0xff] }
 0x1cf   : >> { %2772 = vst [vmem:[%s5027_s29 + $0x70] sm:$0xff] %v2771_v54  ;;  %v2777_v2 = vld [vmem:[%s5031_s30 + $0x88] sm:$0xff]  ;;  %2774 = vst [vmem:[%s5027_s29 + $0x78] sm:$0xff] %v2773_v43  ;;  %v2779_v23 = vld [vmem:[%s5031_s30 + $0x90] sm:$0xff] }
 0x1d0   : >> { %2776 = vst [vmem:[%s5027_s29 + $0x80] sm:$0xff] %v2775_v0  ;;  %2778 = vst [vmem:[%s5027_s29 + $0x88] sm:$0xff] %v2777_v2  ;;  %v2781_v62 = vld [vmem:[%s5031_s30 + $0x98] sm:$0xff]  ;;  %v2783_v37 = vld [vmem:[%s5031_s30 + $0xa0] sm:$0xff] }
 0x1d1   : >> { %2780 = vst [vmem:[%s5027_s29 + $0x90] sm:$0xff] %v2779_v23  ;;  %2782 = vst [vmem:[%s5027_s29 + $0x98] sm:$0xff] %v2781_v62  ;;  %v2785_v4 = vld [vmem:[%s5031_s30 + $0xa8] sm:$0xff]  ;;  %v2787_v44 = vld [vmem:[%s5031_s30 + $0xb0] sm:$0xff] }
 0x1d2   : >> { %2784 = vst [vmem:[%s5027_s29 + $0xa0] sm:$0xff] %v2783_v37  ;;  %v2789_v24 = vld [vmem:[%s5031_s30 + $0xb8] sm:$0xff]  ;;  %2786 = vst [vmem:[%s5027_s29 + $0xa8] sm:$0xff] %v2785_v4  ;;  %v2791_v12 = vld [vmem:[%s5031_s30 + $0xc0] sm:$0xff] }
 0x1d3   : >> { %2788 = vst [vmem:[%s5027_s29 + $0xb0] sm:$0xff] %v2787_v44  ;;  %2790 = vst [vmem:[%s5027_s29 + $0xb8] sm:$0xff] %v2789_v24  ;;  %v2793_v45 = vld [vmem:[%s5031_s30 + $0xc8] sm:$0xff]  ;;  %v2795_v16 = vld [vmem:[%s5031_s30 + $0xd0] sm:$0xff] }
 0x1d4   : >> { %2792 = vst [vmem:[%s5027_s29 + $0xc0] sm:$0xff] %v2791_v12  ;;  %2794 = vst [vmem:[%s5027_s29 + $0xc8] sm:$0xff] %v2793_v45  ;;  %v2797_v6 = vld [vmem:[%s5031_s30 + $0xd8] sm:$0xff]  ;;  %v2799_v59 = vld [vmem:[%s5031_s30 + $0xe0] sm:$0xff] }
 0x1d5   : >> { %2796 = vst [vmem:[%s5027_s29 + $0xd0] sm:$0xff] %v2795_v16  ;;  %v2801_v26 = vld [vmem:[%s5031_s30 + $0xe8] sm:$0xff]  ;;  %2798 = vst [vmem:[%s5027_s29 + $0xd8] sm:$0xff] %v2797_v6  ;;  %v2803_v10 = vld [vmem:[%s5031_s30 + $0xf0] sm:$0xff] }
 0x1d6   : >> { %2800 = vst [vmem:[%s5027_s29 + $0xe0] sm:$0xff] %v2799_v59  ;;  %2802 = vst [vmem:[%s5027_s29 + $0xe8] sm:$0xff] %v2801_v26  ;;  %v2805_v11 = vld [vmem:[%s5031_s30 + $0xf8] sm:$0xff]  ;;  %v2807_v51 = vld [vmem:[%s5031_s30 + $0x100] sm:$0xff] }
 0x1d7   : >> { %2804 = vst [vmem:[%s5027_s29 + $0xf0] sm:$0xff] %v2803_v10  ;;  %2806 = vst [vmem:[%s5027_s29 + $0xf8] sm:$0xff] %v2805_v11  ;;  %v2809_v56 = vld [vmem:[%s5031_s30 + $0x108] sm:$0xff]  ;;  %v2811_v7 = vld [vmem:[%s5031_s30 + $0x110] sm:$0xff] }
 0x1d8   : >> { %2808 = vst [vmem:[%s5027_s29 + $0x100] sm:$0xff] %v2807_v51  ;;  %v2813_v35 = vld [vmem:[%s5031_s30 + $0x118] sm:$0xff]  ;;  %2810 = vst [vmem:[%s5027_s29 + $0x108] sm:$0xff] %v2809_v56  ;;  %v2815_v42 = vld [vmem:[%s5031_s30 + $0x120] sm:$0xff] }
 0x1d9   : >> { %2812 = vst [vmem:[%s5027_s29 + $0x110] sm:$0xff] %v2811_v7  ;;  %2814 = vst [vmem:[%s5027_s29 + $0x118] sm:$0xff] %v2813_v35  ;;  %v2817_v57 = vld [vmem:[%s5031_s30 + $0x128] sm:$0xff]  ;;  %v2819_v18 = vld [vmem:[%s5031_s30 + $0x130] sm:$0xff] }
 0x1da   : >> { %2816 = vst [vmem:[%s5027_s29 + $0x120] sm:$0xff] %v2815_v42  ;;  %2818 = vst [vmem:[%s5027_s29 + $0x128] sm:$0xff] %v2817_v57  ;;  %v2821_v21 = vld [vmem:[%s5031_s30 + $0x138] sm:$0xff]  ;;  %v2823_v28 = vld [vmem:[%s5031_s30 + $0x140] sm:$0xff] }
 0x1db   : >> { %2820 = vst [vmem:[%s5027_s29 + $0x130] sm:$0xff] %v2819_v18  ;;  %v2825_v1 = vld [vmem:[%s5031_s30 + $0x148] sm:$0xff]  ;;  %2822 = vst [vmem:[%s5027_s29 + $0x138] sm:$0xff] %v2821_v21  ;;  %v2827_v53 = vld [vmem:[%s5031_s30 + $0x150] sm:$0xff] }
 0x1dc   : >> { %2824 = vst [vmem:[%s5027_s29 + $0x140] sm:$0xff] %v2823_v28  ;;  %2826 = vst [vmem:[%s5027_s29 + $0x148] sm:$0xff] %v2825_v1  ;;  %v2829_v31 = vld [vmem:[%s5031_s30 + $0x158] sm:$0xff]  ;;  %v2831_v52 = vld [vmem:[%s5031_s30 + $0x160] sm:$0xff] }
 0x1dd   : >> { %2828 = vst [vmem:[%s5027_s29 + $0x150] sm:$0xff] %v2827_v53  ;;  %2830 = vst [vmem:[%s5027_s29 + $0x158] sm:$0xff] %v2829_v31  ;;  %v2833_v40 = vld [vmem:[%s5031_s30 + $0x168] sm:$0xff]  ;;  %v2835_v15 = vld [vmem:[%s5031_s30 + $0x170] sm:$0xff] }
 0x1de   : >> { %2832 = vst [vmem:[%s5027_s29 + $0x160] sm:$0xff] %v2831_v52  ;;  %v2837_v20 = vld [vmem:[%s5031_s30 + $0x178] sm:$0xff]  ;;  %2834 = vst [vmem:[%s5027_s29 + $0x168] sm:$0xff] %v2833_v40  ;;  %v2839_v19 = vld [vmem:[%s5031_s30 + $0x180] sm:$0xff] }
 0x1df   : >> { %2836 = vst [vmem:[%s5027_s29 + $0x170] sm:$0xff] %v2835_v15  ;;  %2838 = vst [vmem:[%s5027_s29 + $0x178] sm:$0xff] %v2837_v20  ;;  %v2841_v58 = vld [vmem:[%s5031_s30 + $0x188] sm:$0xff]  ;;  %v2843_v8 = vld [vmem:[%s5031_s30 + $0x190] sm:$0xff] }
 0x1e0   : >> { %2840 = vst [vmem:[%s5027_s29 + $0x180] sm:$0xff] %v2839_v19  ;;  %2842 = vst [vmem:[%s5027_s29 + $0x188] sm:$0xff] %v2841_v58  ;;  %v2845_v39 = vld [vmem:[%s5031_s30 + $0x198] sm:$0xff]  ;;  %v2847_v30 = vld [vmem:[%s5031_s30 + $0x1a0] sm:$0xff] }
 0x1e1   : >> { %2844 = vst [vmem:[%s5027_s29 + $0x190] sm:$0xff] %v2843_v8  ;;  %v2849_v61 = vld [vmem:[%s5031_s30 + $0x1a8] sm:$0xff]  ;;  %2846 = vst [vmem:[%s5027_s29 + $0x198] sm:$0xff] %v2845_v39  ;;  %v2851_v49 = vld [vmem:[%s5031_s30 + $0x1b0] sm:$0xff]  ;;  %2739 = sbr.rel (!%p2736_p12) target bundleno = 455 (0x1c7), region = 274 }
 0x1e2   : >> { %2848 = vst [vmem:[%s5027_s29 + $0x1a0] sm:$0xff] %v2847_v30  ;;  %2850 = vst [vmem:[%s5027_s29 + $0x1a8] sm:$0xff] %v2849_v61  ;;  %v2853_v47 = vld [vmem:[%s5031_s30 + $0x1b8] sm:$0xff]  ;;  %v2855_v25 = vld [vmem:[%s5031_s30 + $0x1c0] sm:$0xff] }
 0x1e3   : >> { %2852 = vst [vmem:[%s5027_s29 + $0x1b0] sm:$0xff] %v2851_v49  ;;  %2854 = vst [vmem:[%s5027_s29 + $0x1b8] sm:$0xff] %v2853_v47  ;;  %v2857_v9 = vld [vmem:[%s5031_s30 + $0x1c8] sm:$0xff]  ;;  %v2859_v60 = vld [vmem:[%s5031_s30 + $0x1d0] sm:$0xff] }
 0x1e4   : >> { %2856 = vst [vmem:[%s5027_s29 + $0x1c0] sm:$0xff] %v2855_v25  ;;  %v2861_v29 = vld [vmem:[%s5031_s30 + $0x1d8] sm:$0xff]  ;;  %2858 = vst [vmem:[%s5027_s29 + $0x1c8] sm:$0xff] %v2857_v9  ;;  %v2863_v14 = vld [vmem:[%s5031_s30 + $0x1e0] sm:$0xff] }
 0x1e5   : >> { %2860 = vst [vmem:[%s5027_s29 + $0x1d0] sm:$0xff] %v2859_v60  ;;  %2862 = vst [vmem:[%s5027_s29 + $0x1d8] sm:$0xff] %v2861_v29  ;;  %v2865_v38 = vld [vmem:[%s5031_s30 + $0x1e8] sm:$0xff]  ;;  %v2867_v41 = vld [vmem:[%s5031_s30 + $0x1f0] sm:$0xff] }
 0x1e6   : >> { %2864 = vst [vmem:[%s5027_s29 + $0x1e0] sm:$0xff] %v2863_v14  ;;  %2866 = vst [vmem:[%s5027_s29 + $0x1e8] sm:$0xff] %v2865_v38  ;;  %v2869_v55 = vld [vmem:[%s5031_s30 + $0x1f8] sm:$0xff]  ;;  %s7359_s30 = smov %s6751_s14 }
 0x1e7   : >> { %2868 = vst [vmem:[%s5027_s29 + $0x1f0] sm:$0xff] %v2867_v41  ;;  %2870 = vst [vmem:[%s5027_s29 + $0x1f8] sm:$0xff] %v2869_v55  ;;  %s7358_s29 = smov %s6754_s19 }
 0x1e8 PF: > { %s6859_s20 = sand.u32 63, %s7375_s18   ;;  %s4137_s21 = sshll.u32 %s6684_s26, 9 }
 0x1e9   : > { %s2882_s23 = scalar_lea.vmem %s5773_s24, %s4137_s21 [#allocation2]   ;;  %s2884_s13 = scalar_lea.vmem %s6678_s22, %s4137_s21  }
 0x1ea   : > { %p4103_p13 = scmp.le.s32.totalorder %s6859_s20, 0 }
 0x1eb   : > { %s5041_s19 = smov (!%p4103_p13), %s2884_s13   ;;  %s5045_s14 = smov (!%p4103_p13), %s2882_s23  }
 0x1ec   : > { %3781 = sbr.rel (%p4103_p13) target bundleno = 509 (0x1fd), region = 279  ;;  %s5049_s0 = smov (!%p4103_p13), 0  }
 0x1ed   : > { %s5053_s12 = smov (!%p4103_p13), 0  }
 0x1f3 LB: >> { %v2894_v34 = vld [vmem:[%s5047_s14] sm:$0xff]  ;;  %s2896_s18 = sadd.s32 1, %s5051_s0  ;;  %s2888_s12 = sadd.s32 1, %s5055_s12   ;;  %s5055_s12 = sphi %s5053_s12, %s2888_s12   ;;  %s5051_s0 = sphi %s5049_s0, %s5050_s0   ;;  %s5047_s14 = sphi %s5045_s14, %s2901_s14   ;;  %s5043_s19 = sphi %s5041_s19, %s2902_s19  }
 0x1f4   : >> { %2895 = vst [vmem:[%s5043_s19] sm:$0xff] %v2894_v34  ;;  %p2897_p0 = scmp.ge.s32.totalorder %s2896_s18, %s6859_s20  ;;  %p2887_p1 = scmp.ge.s32.totalorder %s2888_s12, %s6859_s20 }
 0x1f6   : >> { %s7379_s18 = smov (%p2897_p0, %s2896_s18), 0  ;;  %2890 = sbr.rel (!%p2887_p1) target bundleno = 499 (0x1f3), region = 285 }
 0x1f7   : >> { %s4104_s24 = sshll.u32 %s7379_s18, 3  ;;  %s5050_s0 = smov %s7379_s18  }
 0x1f8   : >> { %s2901_s14 = scalar_lea.vmem %s2882_s23, %s4104_s24 [#allocation2]   ;;  %s2902_s19 = scalar_lea.vmem %s2884_s13, %s4104_s24  }
 0x1fd PF: > { %2908 = sbr.rel (!%p5186_p4) target bundleno = 588 (0x24c), region = 96  ;;  %s2910_s0 = ssub.s32 (%p5186_p4), 125, %s5200_s16 }
 0x1fe   : > { %s4139_s22 = sshll.u32 (%p5186_p4), %s5174_s27, 9  ;;  %p2911_p2 = scmp.lt.s32.totalorder (%p5186_p4), %s2910_s0, 64 }
 0x1ff   : > { %s6874_s30 = scalar_lea.vmem (%p5186_p4), %s7275_s6, %s4139_s22  }
 0x204   : > { %s7381_s0 = smov (!%p2911_p2, %s2910_s0), 64 }
 0x205   : > { %s4107_s10 = sshll.u32 %s7381_s0, 7 }
 0x206   : > { %p4110_p3 = scmp.eq.s32.totalorder %s4107_s10, 0 }
 0x207   : > { %s6880_s11 = sshrl.u32 (!%p4110_p3), %s7381_s0, 6 }
 0x208   : > { %2919 = sbr.rel (%p4110_p3) target bundleno = 588 (0x24c), region = 100  ;;  %p4111_p5 = scmp.le.s32.totalorder (!%p4110_p3), %s6880_s11, 0 }
 0x20f   : > { %3795 = sbr.rel (%p4111_p5) target bundleno = 567 (0x237), region = 290  ;;  %s7361_s20 = smov (!%p4111_p5), %s6874_s30 }
 0x210   : > { %s7362_s21 = smov (!%p4111_p5), %s6162_s15  ;;  %s6889_s23 = smov (!%p4111_p5), 0  }
 0x211   : > { %s6891_s13 = smov (!%p4111_p5), 0  }
 0x216 LB: >> { %v3107_v13 = vld [vmem:[%s5063_s21] sm:$0xff]  ;;  %v3109_v33 = vld [vmem:[%s5063_s21 + $0x8] sm:$0xff]  ;;  %v3111_v48 = vld [vmem:[%s5063_s21 + $0x10] sm:$0xff]  ;;  %s3235_s19 = sadd.s32 1, %s5067_s23  ;;  %s3101_s13 = sadd.s32 1, %s5071_s13   ;;  %s5071_s13 = sphi %s6891_s13, %s3101_s13   ;;  %s5067_s23 = sphi %s6889_s23, %s7365_s23   ;;  %s5063_s21 = sphi %s7362_s21, %s7364_s21   ;;  %s5059_s20 = sphi %s7361_s20, %s7363_s20  }
 0x217   : >> { %3108 = vst [vmem:[%s5059_s20] sm:$0xff] %v3107_v13  ;;  %3110 = vst [vmem:[%s5059_s20 + $0x8] sm:$0xff] %v3109_v33  ;;  %v3113_v46 = vld [vmem:[%s5063_s21 + $0x18] sm:$0xff]  ;;  %v3115_v63 = vld [vmem:[%s5063_s21 + $0x20] sm:$0xff]  ;;  %p3236_p6 = scmp.ge.s32.totalorder %s3235_s19, %s6880_s11  ;;  %p3100_p7 = scmp.ge.s32.totalorder %s3101_s13, %s6880_s11 }
 0x218   : >> { %3112 = vst [vmem:[%s5059_s20 + $0x10] sm:$0xff] %v3111_v48  ;;  %v3117_v3 = vld [vmem:[%s5063_s21 + $0x28] sm:$0xff]  ;;  %3114 = vst [vmem:[%s5059_s20 + $0x18] sm:$0xff] %v3113_v46  ;;  %v3119_v5 = vld [vmem:[%s5063_s21 + $0x30] sm:$0xff] }
 0x219   : >> { %3116 = vst [vmem:[%s5059_s20 + $0x20] sm:$0xff] %v3115_v63  ;;  %3118 = vst [vmem:[%s5059_s20 + $0x28] sm:$0xff] %v3117_v3  ;;  %v3121_v36 = vld [vmem:[%s5063_s21 + $0x38] sm:$0xff]  ;;  %v3123_v27 = vld [vmem:[%s5063_s21 + $0x40] sm:$0xff]  ;;  %s7383_s19 = smov (%p3236_p6, %s3235_s19), 0 }
 0x21a   : >> { %3120 = vst [vmem:[%s5059_s20 + $0x30] sm:$0xff] %v3119_v5  ;;  %3122 = vst [vmem:[%s5059_s20 + $0x38] sm:$0xff] %v3121_v36  ;;  %v3125_v32 = vld [vmem:[%s5063_s21 + $0x48] sm:$0xff]  ;;  %v3127_v50 = vld [vmem:[%s5063_s21 + $0x50] sm:$0xff]  ;;  %s4112_s14 = sshll.u32 %s7383_s19, 9  ;;  %s7365_s23 = smov %s7383_s19 }
 0x21b   : >> { %3124 = vst [vmem:[%s5059_s20 + $0x40] sm:$0xff] %v3123_v27  ;;  %v3129_v22 = vld [vmem:[%s5063_s21 + $0x58] sm:$0xff]  ;;  %3126 = vst [vmem:[%s5059_s20 + $0x48] sm:$0xff] %v3125_v32  ;;  %v3131_v17 = vld [vmem:[%s5063_s21 + $0x60] sm:$0xff]  ;;  %s6947_s12 = scalar_lea.vmem %s6162_s15, %s4112_s14 [#allocation3]   ;;  %s6950_s18 = scalar_lea.vmem %s6874_s30, %s4112_s14  }
 0x21c   : >> { %3128 = vst [vmem:[%s5059_s20 + $0x50] sm:$0xff] %v3127_v50  ;;  %3130 = vst [vmem:[%s5059_s20 + $0x58] sm:$0xff] %v3129_v22  ;;  %v3133_v54 = vld [vmem:[%s5063_s21 + $0x68] sm:$0xff]  ;;  %v3135_v43 = vld [vmem:[%s5063_s21 + $0x70] sm:$0xff] }
 0x21d   : >> { %3132 = vst [vmem:[%s5059_s20 + $0x60] sm:$0xff] %v3131_v17  ;;  %3134 = vst [vmem:[%s5059_s20 + $0x68] sm:$0xff] %v3133_v54  ;;  %v3137_v0 = vld [vmem:[%s5063_s21 + $0x78] sm:$0xff]  ;;  %v3139_v2 = vld [vmem:[%s5063_s21 + $0x80] sm:$0xff] }
 0x21e   : >> { %3136 = vst [vmem:[%s5059_s20 + $0x70] sm:$0xff] %v3135_v43  ;;  %v3141_v23 = vld [vmem:[%s5063_s21 + $0x88] sm:$0xff]  ;;  %3138 = vst [vmem:[%s5059_s20 + $0x78] sm:$0xff] %v3137_v0  ;;  %v3143_v62 = vld [vmem:[%s5063_s21 + $0x90] sm:$0xff] }
 0x21f   : >> { %3140 = vst [vmem:[%s5059_s20 + $0x80] sm:$0xff] %v3139_v2  ;;  %3142 = vst [vmem:[%s5059_s20 + $0x88] sm:$0xff] %v3141_v23  ;;  %v3145_v37 = vld [vmem:[%s5063_s21 + $0x98] sm:$0xff]  ;;  %v3147_v4 = vld [vmem:[%s5063_s21 + $0xa0] sm:$0xff] }
 0x220   : >> { %3144 = vst [vmem:[%s5059_s20 + $0x90] sm:$0xff] %v3143_v62  ;;  %3146 = vst [vmem:[%s5059_s20 + $0x98] sm:$0xff] %v3145_v37  ;;  %v3149_v44 = vld [vmem:[%s5063_s21 + $0xa8] sm:$0xff]  ;;  %v3151_v24 = vld [vmem:[%s5063_s21 + $0xb0] sm:$0xff] }
 0x221   : >> { %3148 = vst [vmem:[%s5059_s20 + $0xa0] sm:$0xff] %v3147_v4  ;;  %v3153_v12 = vld [vmem:[%s5063_s21 + $0xb8] sm:$0xff]  ;;  %3150 = vst [vmem:[%s5059_s20 + $0xa8] sm:$0xff] %v3149_v44  ;;  %v3155_v45 = vld [vmem:[%s5063_s21 + $0xc0] sm:$0xff] }
 0x222   : >> { %3152 = vst [vmem:[%s5059_s20 + $0xb0] sm:$0xff] %v3151_v24  ;;  %3154 = vst [vmem:[%s5059_s20 + $0xb8] sm:$0xff] %v3153_v12  ;;  %v3157_v16 = vld [vmem:[%s5063_s21 + $0xc8] sm:$0xff]  ;;  %v3159_v6 = vld [vmem:[%s5063_s21 + $0xd0] sm:$0xff] }
 0x223   : >> { %3156 = vst [vmem:[%s5059_s20 + $0xc0] sm:$0xff] %v3155_v45  ;;  %3158 = vst [vmem:[%s5059_s20 + $0xc8] sm:$0xff] %v3157_v16  ;;  %v3161_v59 = vld [vmem:[%s5063_s21 + $0xd8] sm:$0xff]  ;;  %v3163_v26 = vld [vmem:[%s5063_s21 + $0xe0] sm:$0xff] }
 0x224   : >> { %3160 = vst [vmem:[%s5059_s20 + $0xd0] sm:$0xff] %v3159_v6  ;;  %v3165_v10 = vld [vmem:[%s5063_s21 + $0xe8] sm:$0xff]  ;;  %3162 = vst [vmem:[%s5059_s20 + $0xd8] sm:$0xff] %v3161_v59  ;;  %v3167_v11 = vld [vmem:[%s5063_s21 + $0xf0] sm:$0xff] }
 0x225   : >> { %3164 = vst [vmem:[%s5059_s20 + $0xe0] sm:$0xff] %v3163_v26  ;;  %3166 = vst [vmem:[%s5059_s20 + $0xe8] sm:$0xff] %v3165_v10  ;;  %v3169_v51 = vld [vmem:[%s5063_s21 + $0xf8] sm:$0xff]  ;;  %v3171_v56 = vld [vmem:[%s5063_s21 + $0x100] sm:$0xff] }
 0x226   : >> { %3168 = vst [vmem:[%s5059_s20 + $0xf0] sm:$0xff] %v3167_v11  ;;  %3170 = vst [vmem:[%s5059_s20 + $0xf8] sm:$0xff] %v3169_v51  ;;  %v3173_v7 = vld [vmem:[%s5063_s21 + $0x108] sm:$0xff]  ;;  %v3175_v35 = vld [vmem:[%s5063_s21 + $0x110] sm:$0xff] }
 0x227   : >> { %3172 = vst [vmem:[%s5059_s20 + $0x100] sm:$0xff] %v3171_v56  ;;  %v3177_v42 = vld [vmem:[%s5063_s21 + $0x118] sm:$0xff]  ;;  %3174 = vst [vmem:[%s5059_s20 + $0x108] sm:$0xff] %v3173_v7  ;;  %v3179_v57 = vld [vmem:[%s5063_s21 + $0x120] sm:$0xff] }
 0x228   : >> { %3176 = vst [vmem:[%s5059_s20 + $0x110] sm:$0xff] %v3175_v35  ;;  %3178 = vst [vmem:[%s5059_s20 + $0x118] sm:$0xff] %v3177_v42  ;;  %v3181_v18 = vld [vmem:[%s5063_s21 + $0x128] sm:$0xff]  ;;  %v3183_v21 = vld [vmem:[%s5063_s21 + $0x130] sm:$0xff] }
 0x229   : >> { %3180 = vst [vmem:[%s5059_s20 + $0x120] sm:$0xff] %v3179_v57  ;;  %3182 = vst [vmem:[%s5059_s20 + $0x128] sm:$0xff] %v3181_v18  ;;  %v3185_v28 = vld [vmem:[%s5063_s21 + $0x138] sm:$0xff]  ;;  %v3187_v1 = vld [vmem:[%s5063_s21 + $0x140] sm:$0xff] }
 0x22a   : >> { %3184 = vst [vmem:[%s5059_s20 + $0x130] sm:$0xff] %v3183_v21  ;;  %v3189_v53 = vld [vmem:[%s5063_s21 + $0x148] sm:$0xff]  ;;  %3186 = vst [vmem:[%s5059_s20 + $0x138] sm:$0xff] %v3185_v28  ;;  %v3191_v31 = vld [vmem:[%s5063_s21 + $0x150] sm:$0xff] }
 0x22b   : >> { %3188 = vst [vmem:[%s5059_s20 + $0x140] sm:$0xff] %v3187_v1  ;;  %3190 = vst [vmem:[%s5059_s20 + $0x148] sm:$0xff] %v3189_v53  ;;  %v3193_v52 = vld [vmem:[%s5063_s21 + $0x158] sm:$0xff]  ;;  %v3195_v40 = vld [vmem:[%s5063_s21 + $0x160] sm:$0xff] }
 0x22c   : >> { %3192 = vst [vmem:[%s5059_s20 + $0x150] sm:$0xff] %v3191_v31  ;;  %3194 = vst [vmem:[%s5059_s20 + $0x158] sm:$0xff] %v3193_v52  ;;  %v3197_v15 = vld [vmem:[%s5063_s21 + $0x168] sm:$0xff]  ;;  %v3199_v20 = vld [vmem:[%s5063_s21 + $0x170] sm:$0xff] }
 0x22d   : >> { %3196 = vst [vmem:[%s5059_s20 + $0x160] sm:$0xff] %v3195_v40  ;;  %v3201_v19 = vld [vmem:[%s5063_s21 + $0x178] sm:$0xff]  ;;  %3198 = vst [vmem:[%s5059_s20 + $0x168] sm:$0xff] %v3197_v15  ;;  %v3203_v58 = vld [vmem:[%s5063_s21 + $0x180] sm:$0xff] }
 0x22e   : >> { %3200 = vst [vmem:[%s5059_s20 + $0x170] sm:$0xff] %v3199_v20  ;;  %3202 = vst [vmem:[%s5059_s20 + $0x178] sm:$0xff] %v3201_v19  ;;  %v3205_v8 = vld [vmem:[%s5063_s21 + $0x188] sm:$0xff]  ;;  %v3207_v39 = vld [vmem:[%s5063_s21 + $0x190] sm:$0xff] }
 0x22f   : >> { %3204 = vst [vmem:[%s5059_s20 + $0x180] sm:$0xff] %v3203_v58  ;;  %3206 = vst [vmem:[%s5059_s20 + $0x188] sm:$0xff] %v3205_v8  ;;  %v3209_v30 = vld [vmem:[%s5063_s21 + $0x198] sm:$0xff]  ;;  %v3211_v61 = vld [vmem:[%s5063_s21 + $0x1a0] sm:$0xff] }
 0x230   : >> { %3208 = vst [vmem:[%s5059_s20 + $0x190] sm:$0xff] %v3207_v39  ;;  %v3213_v49 = vld [vmem:[%s5063_s21 + $0x1a8] sm:$0xff]  ;;  %3210 = vst [vmem:[%s5059_s20 + $0x198] sm:$0xff] %v3209_v30  ;;  %v3215_v47 = vld [vmem:[%s5063_s21 + $0x1b0] sm:$0xff]  ;;  %3103 = sbr.rel (!%p3100_p7) target bundleno = 534 (0x216), region = 296 }
 0x231   : >> { %3212 = vst [vmem:[%s5059_s20 + $0x1a0] sm:$0xff] %v3211_v61  ;;  %3214 = vst [vmem:[%s5059_s20 + $0x1a8] sm:$0xff] %v3213_v49  ;;  %v3217_v25 = vld [vmem:[%s5063_s21 + $0x1b8] sm:$0xff]  ;;  %v3219_v9 = vld [vmem:[%s5063_s21 + $0x1c0] sm:$0xff] }
 0x232   : >> { %3216 = vst [vmem:[%s5059_s20 + $0x1b0] sm:$0xff] %v3215_v47  ;;  %3218 = vst [vmem:[%s5059_s20 + $0x1b8] sm:$0xff] %v3217_v25  ;;  %v3221_v60 = vld [vmem:[%s5063_s21 + $0x1c8] sm:$0xff]  ;;  %v3223_v29 = vld [vmem:[%s5063_s21 + $0x1d0] sm:$0xff] }
 0x233   : >> { %3220 = vst [vmem:[%s5059_s20 + $0x1c0] sm:$0xff] %v3219_v9  ;;  %v3225_v14 = vld [vmem:[%s5063_s21 + $0x1d8] sm:$0xff]  ;;  %3222 = vst [vmem:[%s5059_s20 + $0x1c8] sm:$0xff] %v3221_v60  ;;  %v3227_v38 = vld [vmem:[%s5063_s21 + $0x1e0] sm:$0xff] }
 0x234   : >> { %3224 = vst [vmem:[%s5059_s20 + $0x1d0] sm:$0xff] %v3223_v29  ;;  %3226 = vst [vmem:[%s5059_s20 + $0x1d8] sm:$0xff] %v3225_v14  ;;  %v3229_v41 = vld [vmem:[%s5063_s21 + $0x1e8] sm:$0xff]  ;;  %v3231_v55 = vld [vmem:[%s5063_s21 + $0x1f0] sm:$0xff] }
 0x235   : >> { %3228 = vst [vmem:[%s5059_s20 + $0x1e0] sm:$0xff] %v3227_v38  ;;  %3230 = vst [vmem:[%s5059_s20 + $0x1e8] sm:$0xff] %v3229_v41  ;;  %v3233_v34 = vld [vmem:[%s5063_s21 + $0x1f8] sm:$0xff]  ;;  %s7364_s21 = smov %s6947_s12 }
 0x236   : >> { %3232 = vst [vmem:[%s5059_s20 + $0x1f0] sm:$0xff] %v3231_v55  ;;  %3234 = vst [vmem:[%s5059_s20 + $0x1f8] sm:$0xff] %v3233_v34  ;;  %s7363_s20 = smov %s6950_s18 }
 0x237 PF: > { %s7055_s24 = sand.u32 63, %s7381_s0   ;;  %s4140_s22 = sshll.u32 %s6880_s11, 9 }
 0x238   : > { %s3246_s26 = scalar_lea.vmem %s6162_s15, %s4140_s22 [#allocation3]   ;;  %s3248_s29 = scalar_lea.vmem %s6874_s30, %s4140_s22  }
 0x239   : > { %p4117_p8 = scmp.le.s32.totalorder %s7055_s24, 0 }
 0x23a   : > { %s5073_s10 = smov (!%p4117_p8), %s3248_s29   ;;  %s5077_s14 = smov (!%p4117_p8), %s3246_s26  }
 0x23b   : > { %3809 = sbr.rel (%p4117_p8) target bundleno = 588 (0x24c), region = 301  ;;  %s5081_s12 = smov (!%p4117_p8), 0  }
 0x23c   : > { %s5085_s19 = smov (!%p4117_p8), 0  }
 0x242 LB: >> { %v3258_v13 = vld [vmem:[%s5079_s14] sm:$0xff]  ;;  %s3260_s0 = sadd.s32 1, %s5083_s12  ;;  %s3252_s19 = sadd.s32 1, %s5087_s19   ;;  %s5087_s19 = sphi %s5085_s19, %s3252_s19   ;;  %s5083_s12 = sphi %s5081_s12, %s5082_s12   ;;  %s5079_s14 = sphi %s5077_s14, %s3265_s14   ;;  %s5075_s10 = sphi %s5073_s10, %s3266_s10  }
 0x243   : >> { %3259 = vst [vmem:[%s5075_s10] sm:$0xff] %v3258_v13  ;;  %p3261_p9 = scmp.ge.s32.totalorder %s3260_s0, %s7055_s24  ;;  %p3251_p10 = scmp.ge.s32.totalorder %s3252_s19, %s7055_s24 }
 0x245   : >> { %s7385_s0 = smov (%p3261_p9, %s3260_s0), 0  ;;  %3254 = sbr.rel (!%p3251_p10) target bundleno = 578 (0x242), region = 307 }
 0x246   : >> { %s4118_s15 = sshll.u32 %s7385_s0, 3  ;;  %s5082_s12 = smov %s7385_s0  }
 0x247   : >> { %s3265_s14 = scalar_lea.vmem %s3246_s26, %s4118_s15 [#allocation3]   ;;  %s3266_s10 = scalar_lea.vmem %s3248_s29, %s4118_s15  }
 0x24c PF: > { %3272 = sbr.rel (!%p5186_p4) target bundleno = 667 (0x29b), region = 148  ;;  %s3274_s30 = ssub.s32 (%p5186_p4), 125, %s5200_s16 }
 0x24d   : > { %s4142_s11 = sshll.u32 (%p5186_p4), %s5174_s27, 9  ;;  %p3275_p11 = scmp.lt.s32.totalorder (%p5186_p4), %s3274_s30, 64 }
 0x24e   : > { %s7070_s23 = scalar_lea.vmem (%p5186_p4), %s7276_s7, %s4142_s11  }
 0x253   : > { %s7387_s30 = smov (!%p3275_p11, %s3274_s30), 64 }
 0x254   : > { %s4121_s13 = sshll.u32 %s7387_s30, 7 }
 0x255   : > { %p4124_p12 = scmp.eq.s32.totalorder %s4121_s13, 0 }
 0x256   : > { %s7076_s18 = sshrl.u32 (!%p4124_p12), %s7387_s30, 6 }
 0x257   : > { %3283 = sbr.rel (%p4124_p12) target bundleno = 667 (0x29b), region = 152  ;;  %p4125_p4 = scmp.le.s32.totalorder (!%p4124_p12), %s7076_s18, 0 }
 0x25e   : > { %3823 = sbr.rel (%p4125_p4) target bundleno = 646 (0x286), region = 312  ;;  %s7366_s27 = smov (!%p4125_p4), %s7070_s23 }
 0x25f   : > { %s7367_s9 = smov (!%p4125_p4), %s6167_s17  ;;  %s7085_s16 = smov (!%p4125_p4), 0  }
 0x260   : > { %s7087_s24 = smov (!%p4125_p4), 0  }
 0x265 LB: >> { %v3471_v33 = vld [vmem:[%s5095_s9] sm:$0xff]  ;;  %v3473_v48 = vld [vmem:[%s5095_s9 + $0x8] sm:$0xff]  ;;  %v3475_v46 = vld [vmem:[%s5095_s9 + $0x10] sm:$0xff]  ;;  %s3599_s22 = sadd.s32 1, %s5099_s16  ;;  %s3465_s24 = sadd.s32 1, %s5103_s24   ;;  %s5103_s24 = sphi %s7087_s24, %s3465_s24   ;;  %s5099_s16 = sphi %s7085_s16, %s7370_s16   ;;  %s5095_s9 = sphi %s7367_s9, %s7369_s9   ;;  %s5091_s27 = sphi %s7366_s27, %s7368_s27  }
 0x266   : >> { %3472 = vst [vmem:[%s5091_s27] sm:$0xff] %v3471_v33  ;;  %3474 = vst [vmem:[%s5091_s27 + $0x8] sm:$0xff] %v3473_v48  ;;  %v3477_v63 = vld [vmem:[%s5095_s9 + $0x18] sm:$0xff]  ;;  %v3479_v3 = vld [vmem:[%s5095_s9 + $0x20] sm:$0xff]  ;;  %p3600_p13 = scmp.ge.s32.totalorder %s3599_s22, %s7076_s18  ;;  %p3464_p0 = scmp.ge.s32.totalorder %s3465_s24, %s7076_s18 }
 0x267   : >> { %3476 = vst [vmem:[%s5091_s27 + $0x10] sm:$0xff] %v3475_v46  ;;  %v3481_v5 = vld [vmem:[%s5095_s9 + $0x28] sm:$0xff]  ;;  %3478 = vst [vmem:[%s5091_s27 + $0x18] sm:$0xff] %v3477_v63  ;;  %v3483_v36 = vld [vmem:[%s5095_s9 + $0x30] sm:$0xff] }
 0x268   : >> { %3480 = vst [vmem:[%s5091_s27 + $0x20] sm:$0xff] %v3479_v3  ;;  %3482 = vst [vmem:[%s5091_s27 + $0x28] sm:$0xff] %v3481_v5  ;;  %v3485_v27 = vld [vmem:[%s5095_s9 + $0x38] sm:$0xff]  ;;  %v3487_v32 = vld [vmem:[%s5095_s9 + $0x40] sm:$0xff]  ;;  %s7389_s22 = smov (%p3600_p13, %s3599_s22), 0 }
 0x269   : >> { %3484 = vst [vmem:[%s5091_s27 + $0x30] sm:$0xff] %v3483_v36  ;;  %3486 = vst [vmem:[%s5091_s27 + $0x38] sm:$0xff] %v3485_v27  ;;  %v3489_v50 = vld [vmem:[%s5095_s9 + $0x48] sm:$0xff]  ;;  %v3491_v22 = vld [vmem:[%s5095_s9 + $0x50] sm:$0xff]  ;;  %s4126_s26 = sshll.u32 %s7389_s22, 9  ;;  %s7370_s16 = smov %s7389_s22 }
 0x26a   : >> { %3488 = vst [vmem:[%s5091_s27 + $0x40] sm:$0xff] %v3487_v32  ;;  %v3493_v17 = vld [vmem:[%s5095_s9 + $0x58] sm:$0xff]  ;;  %3490 = vst [vmem:[%s5091_s27 + $0x48] sm:$0xff] %v3489_v50  ;;  %v3495_v54 = vld [vmem:[%s5095_s9 + $0x60] sm:$0xff]  ;;  %s7143_s29 = scalar_lea.vmem %s6167_s17, %s4126_s26 [#allocation4]   ;;  %s7146_s10 = scalar_lea.vmem %s7070_s23, %s4126_s26  }
 0x26b   : >> { %3492 = vst [vmem:[%s5091_s27 + $0x50] sm:$0xff] %v3491_v22  ;;  %3494 = vst [vmem:[%s5091_s27 + $0x58] sm:$0xff] %v3493_v17  ;;  %v3497_v43 = vld [vmem:[%s5095_s9 + $0x68] sm:$0xff]  ;;  %v3499_v0 = vld [vmem:[%s5095_s9 + $0x70] sm:$0xff] }
 0x26c   : >> { %3496 = vst [vmem:[%s5091_s27 + $0x60] sm:$0xff] %v3495_v54  ;;  %3498 = vst [vmem:[%s5091_s27 + $0x68] sm:$0xff] %v3497_v43  ;;  %v3501_v2 = vld [vmem:[%s5095_s9 + $0x78] sm:$0xff]  ;;  %v3503_v23 = vld [vmem:[%s5095_s9 + $0x80] sm:$0xff] }
 0x26d   : >> { %3500 = vst [vmem:[%s5091_s27 + $0x70] sm:$0xff] %v3499_v0  ;;  %v3505_v62 = vld [vmem:[%s5095_s9 + $0x88] sm:$0xff]  ;;  %3502 = vst [vmem:[%s5091_s27 + $0x78] sm:$0xff] %v3501_v2  ;;  %v3507_v37 = vld [vmem:[%s5095_s9 + $0x90] sm:$0xff] }
 0x26e   : >> { %3504 = vst [vmem:[%s5091_s27 + $0x80] sm:$0xff] %v3503_v23  ;;  %3506 = vst [vmem:[%s5091_s27 + $0x88] sm:$0xff] %v3505_v62  ;;  %v3509_v4 = vld [vmem:[%s5095_s9 + $0x98] sm:$0xff]  ;;  %v3511_v44 = vld [vmem:[%s5095_s9 + $0xa0] sm:$0xff] }
 0x26f   : >> { %3508 = vst [vmem:[%s5091_s27 + $0x90] sm:$0xff] %v3507_v37  ;;  %3510 = vst [vmem:[%s5091_s27 + $0x98] sm:$0xff] %v3509_v4  ;;  %v3513_v24 = vld [vmem:[%s5095_s9 + $0xa8] sm:$0xff]  ;;  %v3515_v12 = vld [vmem:[%s5095_s9 + $0xb0] sm:$0xff] }
 0x270   : >> { %3512 = vst [vmem:[%s5091_s27 + $0xa0] sm:$0xff] %v3511_v44  ;;  %v3517_v45 = vld [vmem:[%s5095_s9 + $0xb8] sm:$0xff]  ;;  %3514 = vst [vmem:[%s5091_s27 + $0xa8] sm:$0xff] %v3513_v24  ;;  %v3519_v16 = vld [vmem:[%s5095_s9 + $0xc0] sm:$0xff] }
 0x271   : >> { %3516 = vst [vmem:[%s5091_s27 + $0xb0] sm:$0xff] %v3515_v12  ;;  %3518 = vst [vmem:[%s5091_s27 + $0xb8] sm:$0xff] %v3517_v45  ;;  %v3521_v6 = vld [vmem:[%s5095_s9 + $0xc8] sm:$0xff]  ;;  %v3523_v59 = vld [vmem:[%s5095_s9 + $0xd0] sm:$0xff] }
 0x272   : >> { %3520 = vst [vmem:[%s5091_s27 + $0xc0] sm:$0xff] %v3519_v16  ;;  %3522 = vst [vmem:[%s5091_s27 + $0xc8] sm:$0xff] %v3521_v6  ;;  %v3525_v26 = vld [vmem:[%s5095_s9 + $0xd8] sm:$0xff]  ;;  %v3527_v10 = vld [vmem:[%s5095_s9 + $0xe0] sm:$0xff] }
 0x273   : >> { %3524 = vst [vmem:[%s5091_s27 + $0xd0] sm:$0xff] %v3523_v59  ;;  %v3529_v11 = vld [vmem:[%s5095_s9 + $0xe8] sm:$0xff]  ;;  %3526 = vst [vmem:[%s5091_s27 + $0xd8] sm:$0xff] %v3525_v26  ;;  %v3531_v51 = vld [vmem:[%s5095_s9 + $0xf0] sm:$0xff] }
 0x274   : >> { %3528 = vst [vmem:[%s5091_s27 + $0xe0] sm:$0xff] %v3527_v10  ;;  %3530 = vst [vmem:[%s5091_s27 + $0xe8] sm:$0xff] %v3529_v11  ;;  %v3533_v56 = vld [vmem:[%s5095_s9 + $0xf8] sm:$0xff]  ;;  %v3535_v7 = vld [vmem:[%s5095_s9 + $0x100] sm:$0xff] }
 0x275   : >> { %3532 = vst [vmem:[%s5091_s27 + $0xf0] sm:$0xff] %v3531_v51  ;;  %3534 = vst [vmem:[%s5091_s27 + $0xf8] sm:$0xff] %v3533_v56  ;;  %v3537_v35 = vld [vmem:[%s5095_s9 + $0x108] sm:$0xff]  ;;  %v3539_v42 = vld [vmem:[%s5095_s9 + $0x110] sm:$0xff] }
 0x276   : >> { %3536 = vst [vmem:[%s5091_s27 + $0x100] sm:$0xff] %v3535_v7  ;;  %v3541_v57 = vld [vmem:[%s5095_s9 + $0x118] sm:$0xff]  ;;  %3538 = vst [vmem:[%s5091_s27 + $0x108] sm:$0xff] %v3537_v35  ;;  %v3543_v18 = vld [vmem:[%s5095_s9 + $0x120] sm:$0xff] }
 0x277   : >> { %3540 = vst [vmem:[%s5091_s27 + $0x110] sm:$0xff] %v3539_v42  ;;  %3542 = vst [vmem:[%s5091_s27 + $0x118] sm:$0xff] %v3541_v57  ;;  %v3545_v21 = vld [vmem:[%s5095_s9 + $0x128] sm:$0xff]  ;;  %v3547_v28 = vld [vmem:[%s5095_s9 + $0x130] sm:$0xff] }
 0x278   : >> { %3544 = vst [vmem:[%s5091_s27 + $0x120] sm:$0xff] %v3543_v18  ;;  %3546 = vst [vmem:[%s5091_s27 + $0x128] sm:$0xff] %v3545_v21  ;;  %v3549_v1 = vld [vmem:[%s5095_s9 + $0x138] sm:$0xff]  ;;  %v3551_v53 = vld [vmem:[%s5095_s9 + $0x140] sm:$0xff] }
 0x279   : >> { %3548 = vst [vmem:[%s5091_s27 + $0x130] sm:$0xff] %v3547_v28  ;;  %v3553_v31 = vld [vmem:[%s5095_s9 + $0x148] sm:$0xff]  ;;  %3550 = vst [vmem:[%s5091_s27 + $0x138] sm:$0xff] %v3549_v1  ;;  %v3555_v52 = vld [vmem:[%s5095_s9 + $0x150] sm:$0xff] }
 0x27a   : >> { %3552 = vst [vmem:[%s5091_s27 + $0x140] sm:$0xff] %v3551_v53  ;;  %3554 = vst [vmem:[%s5091_s27 + $0x148] sm:$0xff] %v3553_v31  ;;  %v3557_v40 = vld [vmem:[%s5095_s9 + $0x158] sm:$0xff]  ;;  %v3559_v15 = vld [vmem:[%s5095_s9 + $0x160] sm:$0xff] }
 0x27b   : >> { %3556 = vst [vmem:[%s5091_s27 + $0x150] sm:$0xff] %v3555_v52  ;;  %3558 = vst [vmem:[%s5091_s27 + $0x158] sm:$0xff] %v3557_v40  ;;  %v3561_v20 = vld [vmem:[%s5095_s9 + $0x168] sm:$0xff]  ;;  %v3563_v19 = vld [vmem:[%s5095_s9 + $0x170] sm:$0xff] }
 0x27c   : >> { %3560 = vst [vmem:[%s5091_s27 + $0x160] sm:$0xff] %v3559_v15  ;;  %v3565_v58 = vld [vmem:[%s5095_s9 + $0x178] sm:$0xff]  ;;  %3562 = vst [vmem:[%s5091_s27 + $0x168] sm:$0xff] %v3561_v20  ;;  %v3567_v8 = vld [vmem:[%s5095_s9 + $0x180] sm:$0xff] }
 0x27d   : >> { %3564 = vst [vmem:[%s5091_s27 + $0x170] sm:$0xff] %v3563_v19  ;;  %3566 = vst [vmem:[%s5091_s27 + $0x178] sm:$0xff] %v3565_v58  ;;  %v3569_v39 = vld [vmem:[%s5095_s9 + $0x188] sm:$0xff]  ;;  %v3571_v30 = vld [vmem:[%s5095_s9 + $0x190] sm:$0xff] }
 0x27e   : >> { %3568 = vst [vmem:[%s5091_s27 + $0x180] sm:$0xff] %v3567_v8  ;;  %3570 = vst [vmem:[%s5091_s27 + $0x188] sm:$0xff] %v3569_v39  ;;  %v3573_v61 = vld [vmem:[%s5095_s9 + $0x198] sm:$0xff]  ;;  %v3575_v49 = vld [vmem:[%s5095_s9 + $0x1a0] sm:$0xff] }
 0x27f   : >> { %3572 = vst [vmem:[%s5091_s27 + $0x190] sm:$0xff] %v3571_v30  ;;  %v3577_v47 = vld [vmem:[%s5095_s9 + $0x1a8] sm:$0xff]  ;;  %3574 = vst [vmem:[%s5091_s27 + $0x198] sm:$0xff] %v3573_v61  ;;  %v3579_v25 = vld [vmem:[%s5095_s9 + $0x1b0] sm:$0xff]  ;;  %3467 = sbr.rel (!%p3464_p0) target bundleno = 613 (0x265), region = 318 }
 0x280   : >> { %3576 = vst [vmem:[%s5091_s27 + $0x1a0] sm:$0xff] %v3575_v49  ;;  %3578 = vst [vmem:[%s5091_s27 + $0x1a8] sm:$0xff] %v3577_v47  ;;  %v3581_v9 = vld [vmem:[%s5095_s9 + $0x1b8] sm:$0xff]  ;;  %v3583_v60 = vld [vmem:[%s5095_s9 + $0x1c0] sm:$0xff] }
 0x281   : >> { %3580 = vst [vmem:[%s5091_s27 + $0x1b0] sm:$0xff] %v3579_v25  ;;  %3582 = vst [vmem:[%s5091_s27 + $0x1b8] sm:$0xff] %v3581_v9  ;;  %v3585_v29 = vld [vmem:[%s5095_s9 + $0x1c8] sm:$0xff]  ;;  %v3587_v14 = vld [vmem:[%s5095_s9 + $0x1d0] sm:$0xff] }
 0x282   : >> { %3584 = vst [vmem:[%s5091_s27 + $0x1c0] sm:$0xff] %v3583_v60  ;;  %v3589_v38 = vld [vmem:[%s5095_s9 + $0x1d8] sm:$0xff]  ;;  %3586 = vst [vmem:[%s5091_s27 + $0x1c8] sm:$0xff] %v3585_v29  ;;  %v3591_v41 = vld [vmem:[%s5095_s9 + $0x1e0] sm:$0xff] }
 0x283   : >> { %3588 = vst [vmem:[%s5091_s27 + $0x1d0] sm:$0xff] %v3587_v14  ;;  %3590 = vst [vmem:[%s5091_s27 + $0x1d8] sm:$0xff] %v3589_v38  ;;  %v3593_v55 = vld [vmem:[%s5095_s9 + $0x1e8] sm:$0xff]  ;;  %v3595_v34 = vld [vmem:[%s5095_s9 + $0x1f0] sm:$0xff] }
 0x284   : >> { %3592 = vst [vmem:[%s5091_s27 + $0x1e0] sm:$0xff] %v3591_v41  ;;  %3594 = vst [vmem:[%s5091_s27 + $0x1e8] sm:$0xff] %v3593_v55  ;;  %v3597_v13 = vld [vmem:[%s5095_s9 + $0x1f8] sm:$0xff]  ;;  %s7369_s9 = smov %s7143_s29 }
 0x285   : >> { %3596 = vst [vmem:[%s5091_s27 + $0x1f0] sm:$0xff] %v3595_v34  ;;  %3598 = vst [vmem:[%s5091_s27 + $0x1f8] sm:$0xff] %v3597_v13  ;;  %s7368_s27 = smov %s7146_s10 }
 0x286 PF: > { %s7251_s14 = sand.u32 63, %s7387_s30   ;;  %s4143_s12 = sshll.u32 %s7076_s18, 9 }
 0x287   : > { %s3610_s19 = scalar_lea.vmem %s6167_s17, %s4143_s12 [#allocation4]   ;;  %s3612_s0 = scalar_lea.vmem %s7070_s23, %s4143_s12  }
 0x288   : > { %p4131_p1 = scmp.le.s32.totalorder %s7251_s14, 0 }
 0x289   : > { %s5105_s15 = smov (!%p4131_p1), %s3612_s0   ;;  %s5109_s11 = smov (!%p4131_p1), %s3610_s19  }
 0x28a   : > { %3837 = sbr.rel (%p4131_p1) target bundleno = 667 (0x29b), region = 323  ;;  %s5113_s20 = smov (!%p4131_p1), 0  }
 0x28b   : > { %s5117_s21 = smov (!%p4131_p1), 0  }
 0x291 LB: >> { %v3622_v33 = vld [vmem:[%s5111_s11] sm:$0xff]  ;;  %s3624_s30 = sadd.s32 1, %s5115_s20  ;;  %s3616_s21 = sadd.s32 1, %s5119_s21   ;;  %s5119_s21 = sphi %s5117_s21, %s3616_s21   ;;  %s5115_s20 = sphi %s5113_s20, %s5114_s20   ;;  %s5111_s11 = sphi %s5109_s11, %s3629_s11   ;;  %s5107_s15 = sphi %s5105_s15, %s3630_s15  }
 0x292   : >> { %3623 = vst [vmem:[%s5107_s15] sm:$0xff] %v3622_v33  ;;  %p3625_p2 = scmp.ge.s32.totalorder %s3624_s30, %s7251_s14  ;;  %p3615_p3 = scmp.ge.s32.totalorder %s3616_s21, %s7251_s14 }
 0x294   : >> { %s7391_s30 = smov (%p3625_p2, %s3624_s30), 0  ;;  %3618 = sbr.rel (!%p3615_p3) target bundleno = 657 (0x291), region = 329 }
 0x295   : >> { %s4132_s17 = sshll.u32 %s7391_s30, 3  ;;  %s5114_s20 = smov %s7391_s30  }
 0x296   : >> { %s3629_s11 = scalar_lea.vmem %s3610_s19, %s4132_s17 [#allocation4]   ;;  %s3630_s15 = scalar_lea.vmem %s3612_s0, %s4132_s17  }
 0x29b PF: > { %p15_p5 = scmp.ge.s32.totalorder %s5176_s28, 4   ;;  %s7371_s24 = smov %s5019_s25 }
 0x29c   : > { %s7372_s25 = smov %s5184_s8  ;;  %s7373_s26 = smov %s5176_s28 }
 0x29d   :  { %17 = sbr.rel (!%p15_p5) target bundleno = 4 (0x4), region = 340 }

</bundles_post_ra>
